<compile_context>
chip_gen: v7x
topology: tpu7x:2x2x1
jax: 0.10.0
libtpu: 0.0.40
codegen_flags: <defaults>
</compile_context>

<pallas_src>
import functools

import jax
import jax.numpy as jnp
from jax.experimental import pallas as pl
from jax.experimental.pallas import tpu as pltpu

LANE = 128  # padding multiple for node / feature dims (MXU-native on v5e).


def _round_up(x, m):
    return ((x + m - 1) // m) * m


# ----------------------------------------------------------------------------
# Kernels (row-tiled over the node dimension).
# ----------------------------------------------------------------------------
def _gcn_layer_kernel(a_ref, h_ref, w_ref, b_ref, out_ref):
    """One GCN layer on a row-tile of nodes: out = relu((A_tile @ H) @ W + b).

    a_ref  : [TM, NP]      bf16   adjacency row-tile (streamed per grid step)
    h_ref  : [NP, FinP]    bf16   previous-layer activations (resident)
    w_ref  : [FinP, FoutP] bf16   layer weight (resident)
    b_ref  : [1, FoutP]    f32    layer bias (resident)
    out_ref: [TM, FoutP]   bf16   this layer's activations (row-tile)
    """
    ah = jnp.dot(a_ref[...], h_ref[...], preferred_element_type=jnp.float32)
    z = jnp.dot(ah.astype(jnp.bfloat16), w_ref[...],
                preferred_element_type=jnp.float32)
    out_ref[...] = jnp.maximum(z + b_ref[...], 0.0).astype(out_ref.dtype)


def _gcn_proj_kernel(a_ref, h_ref, w_ref, b_ref,
                     w1_ref, b1_ref, w2_ref, b2_ref,
                     emb_ref, proj_ref):
    """Last GCN layer fused with the 2-layer projection head (row-tile)."""
    ah = jnp.dot(a_ref[...], h_ref[...], preferred_element_type=jnp.float32)
    e = jnp.dot(ah.astype(jnp.bfloat16), w_ref[...],
                preferred_element_type=jnp.float32)
    e = jnp.maximum(e + b_ref[...], 0.0)
    emb_ref[...] = e.astype(emb_ref.dtype)

    # Projection head: z = relu(e @ W1 + b1) @ W2 + b2   (no ReLU on output)
    z = jnp.dot(e.astype(jnp.bfloat16), w1_ref[...],
                preferred_element_type=jnp.float32)
    z = jnp.maximum(z + b1_ref[...], 0.0)
    z = jnp.dot(z.astype(jnp.bfloat16), w2_ref[...],
                preferred_element_type=jnp.float32) + b2_ref[...]
    proj_ref[...] = z.astype(proj_ref.dtype)


# ----------------------------------------------------------------------------
# pallas_call wrappers.
# ----------------------------------------------------------------------------
def _row_tile(tm, cols):
    return pl.BlockSpec((tm, cols), lambda i: (i, 0))


def _resident(rows, cols):
    return pl.BlockSpec((rows, cols), lambda i: (0, 0))


def _vmem_limit(block_bytes_total):
    """2x block footprint (double buffering) + headroom, capped under v7x VMEM."""
    need = 2 * block_bytes_total + (1 << 20)
    return int(min(48 * (1 << 20), max(need, 4 * (1 << 20))))


def _pick_tm(n_pad):
    return 256 if (n_pad % 256 == 0 and n_pad >= 512) else 128


def gcn_layer(a_pad, h_pad, w_pad, b_pad, *, tm):
    n_pad = a_pad.shape[0]
    fin_p = h_pad.shape[1]
    fout_p = w_pad.shape[1]
    blk_bytes = (tm * n_pad * 2 + n_pad * fin_p * 2 + fin_p * fout_p * 2
                 + fout_p * 4 + tm * fout_p * 2)
    return pl.pallas_call(
        _gcn_layer_kernel,
        out_shape=jax.ShapeDtypeStruct((n_pad, fout_p), jnp.bfloat16),
        grid=(n_pad // tm,),
        in_specs=[_row_tile(tm, n_pad),
                  _resident(n_pad, fin_p),
                  _resident(fin_p, fout_p),
                  _resident(1, fout_p)],
        out_specs=_row_tile(tm, fout_p),
        compiler_params=pltpu.CompilerParams(
            dimension_semantics=("parallel",),
            vmem_limit_bytes=_vmem_limit(blk_bytes)),
    )(a_pad, h_pad, w_pad, b_pad)


def gcn_proj(a_pad, h_pad, w_pad, b_pad, w1, b1, w2, b2, *, tm):
    n_pad = a_pad.shape[0]
    fin_p = h_pad.shape[1]
    emb_p = w_pad.shape[1]
    hid_p = w1.shape[1]
    out_p = w2.shape[1]
    blk_bytes = (tm * n_pad * 2 + n_pad * fin_p * 2
                 + fin_p * emb_p * 2 + emb_p * 4
                 + emb_p * hid_p * 2 + hid_p * 4
                 + hid_p * out_p * 2 + out_p * 4
                 + tm * emb_p * 4 + tm * out_p * 4)
    return pl.pallas_call(
        _gcn_proj_kernel,
        out_shape=(jax.ShapeDtypeStruct((n_pad, emb_p), jnp.float32),
                   jax.ShapeDtypeStruct((n_pad, out_p), jnp.float32)),
        grid=(n_pad // tm,),
        in_specs=[_row_tile(tm, n_pad),
                  _resident(n_pad, fin_p),
                  _resident(fin_p, emb_p),
                  _resident(1, emb_p),
                  _resident(emb_p, hid_p),
                  _resident(1, hid_p),
                  _resident(hid_p, out_p),
                  _resident(1, out_p)],
        out_specs=(_row_tile(tm, emb_p), _row_tile(tm, out_p)),
        compiler_params=pltpu.CompilerParams(
            dimension_semantics=("parallel",),
            vmem_limit_bytes=_vmem_limit(blk_bytes)),
    )(a_pad, h_pad, w_pad, b_pad, w1, b1, w2, b2)


# ----------------------------------------------------------------------------
# Parameter init, adjacency normalization, one-time padding (hoisted).
# ----------------------------------------------------------------------------
def init_params(key, gnn_input_size, embedding_size, num_layers,
                proj_output_size, hidden_size):
    """Glorot-uniform style init; mirrors the implied GCN + projection head."""
    assert num_layers >= 1
    params = {"gcn": [], "proj": []}
    dims = ([gnn_input_size]
            + [hidden_size] * (num_layers - 1)
            + [embedding_size])
    keys = jax.random.split(key, num_layers + 2)
    for i in range(num_layers):
        f_in, f_out = dims[i], dims[i + 1]
        limit = jnp.sqrt(6.0 / (f_in + f_out))
        w = jax.random.uniform(keys[i], (f_in, f_out), jnp.float32, -limit, limit)
        b = jnp.zeros((1, f_out), jnp.float32)
        params["gcn"].append((w, b))
    limit1 = jnp.sqrt(6.0 / (embedding_size + hidden_size))
    w1 = jax.random.uniform(keys[-2], (embedding_size, hidden_size),
                            jnp.float32, -limit1, limit1)
    b1 = jnp.zeros((1, hidden_size), jnp.float32)
    limit2 = jnp.sqrt(6.0 / (hidden_size + proj_output_size))
    w2 = jax.random.uniform(keys[-1], (hidden_size, proj_output_size),
                            jnp.float32, -limit2, limit2)
    b2 = jnp.zeros((1, proj_output_size), jnp.float32)
    params["proj"] = [(w1, b1), (w2, b2)]
    return params


def normalize_adjacency(adj):
    """A_hat = D^{-1/2} (A + I) D^{-1/2}  (standard GCN normalization)."""
    n = adj.shape[0]
    a = adj + jnp.eye(n, dtype=adj.dtype)
    deg = jnp.sum(a, axis=1)
    d_inv_sqrt = 1.0 / jnp.sqrt(jnp.maximum(deg, 1e-12))
    return a * d_inv_sqrt[:, None] * d_inv_sqrt[None, :]


def prepare_params(params):
    """One-time: pad every layer's W/b to its own 128-multiples; W -> bf16.

    Run at init, NOT on the per-forward path.  Note padded node ROWS of each
    layer's output contain relu(b) (not zero) when biases are nonzero; this is
    harmless because A_hat's padded columns are zero and the wrapper slices
    back to the un-padded rows.
    """
    def pad_layer(w, b):
        f_in, f_out = w.shape
        fin_p, fout_p = _round_up(f_in, LANE), _round_up(f_out, LANE)
        w_p = jnp.zeros((fin_p, fout_p), jnp.float32).at[:f_in, :f_out].set(w)
        b_p = jnp.zeros((1, fout_p), jnp.float32).at[:, :f_out].set(b)
        return w_p.astype(jnp.bfloat16), b_p

    return {"gcn": [pad_layer(w, b) for (w, b) in params["gcn"]],
            "proj": [pad_layer(w, b) for (w, b) in params["proj"]]}


def prepare_graph(x, a_hat):
    """One-time (static graph): pad + bf16-cast node features and A_hat."""
    n, f_in = x.shape
    n_pad = _round_up(max(n, LANE), LANE)
    f_pad = _round_up(f_in, LANE)
    x_pad = jnp.zeros((n_pad, f_pad), jnp.bfloat16).at[:n, :f_in].set(
        x.astype(jnp.bfloat16))
    a_pad = jnp.zeros((n_pad, n_pad), jnp.bfloat16).at[:n, :n].set(
        a_hat.astype(jnp.bfloat16))
    return a_pad, x_pad


# ----------------------------------------------------------------------------
# Forward (jitted; operates on pre-padded arrays only).
# ----------------------------------------------------------------------------
@jax.jit
def cl_model_forward_padded(prep, a_pad, x_pad):
    """GCN encoder + projection head.  Returns padded (embedding, projection)."""
    tm = _pick_tm(a_pad.shape[0])
    h = x_pad
    for (w, b) in prep["gcn"][:-1]:
        h = gcn_layer(a_pad, h, w, b, tm=tm)
    w_last, b_last = prep["gcn"][-1]
    (w1, b1), (w2, b2) = prep["proj"]
    return gcn_proj(a_pad, h, w_last, b_last, w1, b1, w2, b2, tm=tm)


def reference_forward(params, x, a_hat):
    """Pure-JAX f32 reference for correctness checking."""
    h = x
    for w, b in params["gcn"]:
        h = jnp.maximum(a_hat @ (h @ w) + b, 0.0)
    emb = h
    (w1, b1), (w2, b2) = params["proj"]
    z = jnp.maximum(emb @ w1 + b1, 0.0)
    z = z @ w2 + b2
    return emb, z


# ----------------------------------------------------------------------------
# Main
# ----------------------------------------------------------------------------
if __name__ == "__main__":
    # Small shapes consistent with the module's constructor.
    N = 16                 # number of graph nodes
    GNN_INPUT_SIZE = 32
    EMBEDDING_SIZE = 32
    HIDDEN_SIZE = 64
    PROJ_OUTPUT_SIZE = 32
    NUM_LAYERS = 3

    key = jax.random.PRNGKey(0)
    k_param, k_x, k_a = jax.random.split(key, 3)

    params = init_params(k_param, GNN_INPUT_SIZE, EMBEDDING_SIZE,
                         NUM_LAYERS, PROJ_OUTPUT_SIZE, HIDDEN_SIZE)

    # Node features and a random symmetric adjacency.
    x = jax.random.normal(k_x, (N, GNN_INPUT_SIZE), jnp.float32)
    a_rand = jax.random.uniform(k_a, (N, N), jnp.float32)
    adj = (a_rand + a_rand.T > 1.0).astype(jnp.float32)
    adj = adj * (1.0 - jnp.eye(N, dtype=jnp.float32))
    a_hat = normalize_adjacency(adj)

    # One-time prep (hoisted off the per-call path).
    prep = prepare_params(params)
    a_pad, x_pad = prepare_graph(x, a_hat)
    prep = jax.block_until_ready(prep)
    a_pad, x_pad = jax.block_until_ready((a_pad, x_pad))

    emb_pad, proj_pad = cl_model_forward_padded(prep, a_pad, x_pad)
    jax.block_until_ready((emb_pad, proj_pad))

    embedding = emb_pad[:N, :EMBEDDING_SIZE]
    projection = proj_pad[:N, :PROJ_OUTPUT_SIZE]

    assert embedding.shape == (N, EMBEDDING_SIZE)
    assert projection.shape == (N, PROJ_OUTPUT_SIZE)
    assert bool(jnp.all(jnp.isfinite(embedding)))
    assert bool(jnp.all(jnp.isfinite(projection)))

    # Correctness vs pure-JAX f32 reference (bf16 matmul operands, f32 accum).
    emb_ref, proj_ref = reference_forward(params, x, a_hat)
    assert bool(jnp.allclose(embedding, emb_ref, rtol=3e-2, atol=3e-2))
    assert bool(jnp.allclose(projection, proj_ref, rtol=3e-2, atol=3e-2))

    print("KERNEL_OK")
</pallas_src>

<mosaic_0001>
module attributes {stable_mosaic.version = 11 : i64} {
  func.func @_gcn_layer_kernel(%arg0: i32, %arg1: memref<128x128xbf16, #tpu.memory_space<vmem>>, %arg2: memref<128x128xbf16, #tpu.memory_space<vmem>>, %arg3: memref<128x128xbf16, #tpu.memory_space<vmem>>, %arg4: memref<1x128xf32, #tpu.memory_space<vmem>>, %arg5: memref<128x128xbf16, #tpu.memory_space<vmem>>) attributes {dimension_semantics = [#tpu.dimension_semantics<parallel>], iteration_bounds = array<i64: 1>, scalar_prefetch = 0 : i64, scratch_operands = 0 : i64, tpu.core_type = #tpu.core_type<tc>, window_params = [{transform_indices = @transform_0, window_bounds = array<i64: 128, 128>}, {pipeline_mode = #tpu.pipeline_mode<synchronous>, transform_indices = @transform_1, window_bounds = array<i64: 128, 128>}, {pipeline_mode = #tpu.pipeline_mode<synchronous>, transform_indices = @transform_2, window_bounds = array<i64: 128, 128>}, {pipeline_mode = #tpu.pipeline_mode<synchronous>, transform_indices = @transform_3, window_bounds = array<i64: 1, 128>}, {transform_indices = @transform_4, window_bounds = array<i64: 128, 128>}]} {
    %c0 = arith.constant 0 : index
    %c0_0 = arith.constant 0 : index
    %0 = vector.load %arg1[%c0, %c0_0] : memref<128x128xbf16, #tpu.memory_space<vmem>>, vector<128x128xbf16>
    %c0_1 = arith.constant 0 : index
    %c0_2 = arith.constant 0 : index
    %1 = vector.load %arg2[%c0_1, %c0_2] : memref<128x128xbf16, #tpu.memory_space<vmem>>, vector<128x128xbf16>
    %cst = arith.constant dense<0.000000e+00> : vector<128x128xf32>
    %2 = tpu.matmul %0, %1, %cst {dimension_numbers = #tpu.dot_dimension_numbers<[1], [0], [0], [1], [0, 0, 1, 1], [], []>} : vector<128x128xbf16>, vector<128x128xbf16>, vector<128x128xf32> -> vector<128x128xf32>
    %3 = arith.truncf %2 : vector<128x128xf32> to vector<128x128xbf16>
    %c0_3 = arith.constant 0 : index
    %c0_4 = arith.constant 0 : index
    %4 = vector.load %arg3[%c0_3, %c0_4] : memref<128x128xbf16, #tpu.memory_space<vmem>>, vector<128x128xbf16>
    %cst_5 = arith.constant dense<0.000000e+00> : vector<128x128xf32>
    %5 = tpu.matmul %3, %4, %cst_5 {dimension_numbers = #tpu.dot_dimension_numbers<[1], [0], [0], [1], [0, 0, 1, 1], [], []>} : vector<128x128xbf16>, vector<128x128xbf16>, vector<128x128xf32> -> vector<128x128xf32>
    %c0_6 = arith.constant 0 : index
    %c0_7 = arith.constant 0 : index
    %6 = vector.load %arg4[%c0_6, %c0_7] : memref<1x128xf32, #tpu.memory_space<vmem>>, vector<1x128xf32>
    %7 = vector.broadcast %6 : vector<1x128xf32> to vector<128x128xf32>
    %8 = arith.addf %5, %7 : vector<128x128xf32>
    %cst_8 = arith.constant 0.000000e+00 : f32
    %9 = vector.broadcast %cst_8 : f32 to vector<128x128xf32>
    %10 = arith.maximumf %8, %9 : vector<128x128xf32>
    %11 = arith.truncf %10 : vector<128x128xf32> to vector<128x128xbf16>
    %c0_9 = arith.constant 0 : index
    %c0_10 = arith.constant 0 : index
    %12 = vector.load %arg5[%c0_9, %c0_10] : memref<128x128xbf16, #tpu.memory_space<vmem>>, vector<128x128xbf16>
    tpu.vector_store %arg5[%c0_9, %c0_10], %11 {strides = array<i32>} : memref<128x128xbf16, #tpu.memory_space<vmem>>, vector<128x128xbf16>,
    return
  }
  func.func @transform_0(%arg0: i32) -> (i32, i32) {
    %c0_i32 = arith.constant 0 : i32
    %c0_i32_0 = arith.constant 0 : i32
    return %arg0, %c0_i32 : i32, i32
  }
  func.func @transform_1(%arg0: i32) -> (i32, i32) {
    %c0_i32 = arith.constant 0 : i32
    %c0_i32_0 = arith.constant 0 : i32
    %c0_i32_1 = arith.constant 0 : i32
    return %c0_i32, %c0_i32_0 : i32, i32
  }
  func.func @transform_2(%arg0: i32) -> (i32, i32) {
    %c0_i32 = arith.constant 0 : i32
    %c0_i32_0 = arith.constant 0 : i32
    %c0_i32_1 = arith.constant 0 : i32
    return %c0_i32, %c0_i32_0 : i32, i32
  }
  func.func @transform_3(%arg0: i32) -> (i32, i32) {
    %c0_i32 = arith.constant 0 : i32
    %c0_i32_0 = arith.constant 0 : i32
    %c0_i32_1 = arith.constant 0 : i32
    return %c0_i32, %c0_i32_0 : i32, i32
  }
  func.func @transform_4(%arg0: i32) -> (i32, i32) {
    %c0_i32 = arith.constant 0 : i32
    %c0_i32_0 = arith.constant 0 : i32
    return %arg0, %c0_i32 : i32, i32
  }
}

module attributes {stable_mosaic.version = 11 : i64} {
  func.func @_gcn_proj_kernel(%arg0: i32, %arg1: memref<128x128xbf16, #tpu.memory_space<vmem>>, %arg2: memref<128x128xbf16, #tpu.memory_space<vmem>>, %arg3: memref<128x128xbf16, #tpu.memory_space<vmem>>, %arg4: memref<1x128xf32, #tpu.memory_space<vmem>>, %arg5: memref<128x128xbf16, #tpu.memory_space<vmem>>, %arg6: memref<1x128xf32, #tpu.memory_space<vmem>>, %arg7: memref<128x128xbf16, #tpu.memory_space<vmem>>, %arg8: memref<1x128xf32, #tpu.memory_space<vmem>>, %arg9: memref<128x128xf32, #tpu.memory_space<vmem>>, %arg10: memref<128x128xf32, #tpu.memory_space<vmem>>) attributes {dimension_semantics = [#tpu.dimension_semantics<parallel>], iteration_bounds = array<i64: 1>, scalar_prefetch = 0 : i64, scratch_operands = 0 : i64, tpu.core_type = #tpu.core_type<tc>, window_params = [{transform_indices = @transform_0, window_bounds = array<i64: 128, 128>}, {pipeline_mode = #tpu.pipeline_mode<synchronous>, transform_indices = @transform_1, window_bounds = array<i64: 128, 128>}, {pipeline_mode = #tpu.pipeline_mode<synchronous>, transform_indices = @transform_2, window_bounds = array<i64: 128, 128>}, {pipeline_mode = #tpu.pipeline_mode<synchronous>, transform_indices = @transform_3, window_bounds = array<i64: 1, 128>}, {pipeline_mode = #tpu.pipeline_mode<synchronous>, transform_indices = @transform_4, window_bounds = array<i64: 128, 128>}, {pipeline_mode = #tpu.pipeline_mode<synchronous>, transform_indices = @transform_5, window_bounds = array<i64: 1, 128>}, {pipeline_mode = #tpu.pipeline_mode<synchronous>, transform_indices = @transform_6, window_bounds = array<i64: 128, 128>}, {pipeline_mode = #tpu.pipeline_mode<synchronous>, transform_indices = @transform_7, window_bounds = array<i64: 1, 128>}, {transform_indices = @transform_8, window_bounds = array<i64: 128, 128>}, {transform_indices = @transform_9, window_bounds = array<i64: 128, 128>}]} {
    %c0 = arith.constant 0 : index
    %c0_0 = arith.constant 0 : index
    %0 = vector.load %arg1[%c0, %c0_0] : memref<128x128xbf16, #tpu.memory_space<vmem>>, vector<128x128xbf16>
    %c0_1 = arith.constant 0 : index
    %c0_2 = arith.constant 0 : index
    %1 = vector.load %arg2[%c0_1, %c0_2] : memref<128x128xbf16, #tpu.memory_space<vmem>>, vector<128x128xbf16>
    %cst = arith.constant dense<0.000000e+00> : vector<128x128xf32>
    %2 = tpu.matmul %0, %1, %cst {dimension_numbers = #tpu.dot_dimension_numbers<[1], [0], [0], [1], [0, 0, 1, 1], [], []>} : vector<128x128xbf16>, vector<128x128xbf16>, vector<128x128xf32> -> vector<128x128xf32>
    %3 = arith.truncf %2 : vector<128x128xf32> to vector<128x128xbf16>
    %c0_3 = arith.constant 0 : index
    %c0_4 = arith.constant 0 : index
    %4 = vector.load %arg3[%c0_3, %c0_4] : memref<128x128xbf16, #tpu.memory_space<vmem>>, vector<128x128xbf16>
    %cst_5 = arith.constant dense<0.000000e+00> : vector<128x128xf32>
    %5 = tpu.matmul %3, %4, %cst_5 {dimension_numbers = #tpu.dot_dimension_numbers<[1], [0], [0], [1], [0, 0, 1, 1], [], []>} : vector<128x128xbf16>, vector<128x128xbf16>, vector<128x128xf32> -> vector<128x128xf32>
    %c0_6 = arith.constant 0 : index
    %c0_7 = arith.constant 0 : index
    %6 = vector.load %arg4[%c0_6, %c0_7] : memref<1x128xf32, #tpu.memory_space<vmem>>, vector<1x128xf32>
    %7 = vector.broadcast %6 : vector<1x128xf32> to vector<128x128xf32>
    %8 = arith.addf %5, %7 : vector<128x128xf32>
    %cst_8 = arith.constant 0.000000e+00 : f32
    %9 = vector.broadcast %cst_8 : f32 to vector<128x128xf32>
    %10 = arith.maximumf %8, %9 : vector<128x128xf32>
    %c0_9 = arith.constant 0 : index
    %c0_10 = arith.constant 0 : index
    %11 = vector.load %arg9[%c0_9, %c0_10] : memref<128x128xf32, #tpu.memory_space<vmem>>, vector<128x128xf32>
    tpu.vector_store %arg9[%c0_9, %c0_10], %10 {strides = array<i32>} : memref<128x128xf32, #tpu.memory_space<vmem>>, vector<128x128xf32>,
    %12 = arith.truncf %10 : vector<128x128xf32> to vector<128x128xbf16>
    %c0_11 = arith.constant 0 : index
    %c0_12 = arith.constant 0 : index
    %13 = vector.load %arg5[%c0_11, %c0_12] : memref<128x128xbf16, #tpu.memory_space<vmem>>, vector<128x128xbf16>
    %cst_13 = arith.constant dense<0.000000e+00> : vector<128x128xf32>
    %14 = tpu.matmul %12, %13, %cst_13 {dimension_numbers = #tpu.dot_dimension_numbers<[1], [0], [0], [1], [0, 0, 1, 1], [], []>} : vector<128x128xbf16>, vector<128x128xbf16>, vector<128x128xf32> -> vector<128x128xf32>
    %c0_14 = arith.constant 0 : index
    %c0_15 = arith.constant 0 : index
    %15 = vector.load %arg6[%c0_14, %c0_15] : memref<1x128xf32, #tpu.memory_space<vmem>>, vector<1x128xf32>
    %16 = vector.broadcast %15 : vector<1x128xf32> to vector<128x128xf32>
    %17 = arith.addf %14, %16 : vector<128x128xf32>
    %cst_16 = arith.constant 0.000000e+00 : f32
    %18 = vector.broadcast %cst_16 : f32 to vector<128x128xf32>
    %19 = arith.maximumf %17, %18 : vector<128x128xf32>
    %20 = arith.truncf %19 : vector<128x128xf32> to vector<128x128xbf16>
    %c0_17 = arith.constant 0 : index
    %c0_18 = arith.constant 0 : index
    %21 = vector.load %arg7[%c0_17, %c0_18] : memref<128x128xbf16, #tpu.memory_space<vmem>>, vector<128x128xbf16>
    %cst_19 = arith.constant dense<0.000000e+00> : vector<128x128xf32>
    %22 = tpu.matmul %20, %21, %cst_19 {dimension_numbers = #tpu.dot_dimension_numbers<[1], [0], [0], [1], [0, 0, 1, 1], [], []>} : vector<128x128xbf16>, vector<128x128xbf16>, vector<128x128xf32> -> vector<128x128xf32>
    %c0_20 = arith.constant 0 : index
    %c0_21 = arith.constant 0 : index
    %23 = vector.load %arg8[%c0_20, %c0_21] : memref<1x128xf32, #tpu.memory_space<vmem>>, vector<1x128xf32>
    %24 = vector.broadcast %23 : vector<1x128xf32> to vector<128x128xf32>
    %25 = arith.addf %22, %24 : vector<128x128xf32>
    %c0_22 = arith.constant 0 : index
    %c0_23 = arith.constant 0 : index
    %26 = vector.load %arg10[%c0_22, %c0_23] : memref<128x128xf32, #tpu.memory_space<vmem>>, vector<128x128xf32>
    tpu.vector_store %arg10[%c0_22, %c0_23], %25 {strides = array<i32>} : memref<128x128xf32, #tpu.memory_space<vmem>>, vector<128x128xf32>,
    return
  }
  func.func @transform_0(%arg0: i32) -> (i32, i32) {
    %c0_i32 = arith.constant 0 : i32
    %c0_i32_0 = arith.constant 0 : i32
    return %arg0, %c0_i32 : i32, i32
  }
  func.func @transform_1(%arg0: i32) -> (i32, i32) {
    %c0_i32 = arith.constant 0 : i32
    %c0_i32_0 = arith.constant 0 : i32
    %c0_i32_1 = arith.constant 0 : i32
    return %c0_i32, %c0_i32_0 : i32, i32
  }
  func.func @transform_2(%arg0: i32) -> (i32, i32) {
    %c0_i32 = arith.constant 0 : i32
    %c0_i32_0 = arith.constant 0 : i32
    %c0_i32_1 = arith.constant 0 : i32
    return %c0_i32, %c0_i32_0 : i32, i32
  }
  func.func @transform_3(%arg0: i32) -> (i32, i32) {
    %c0_i32 = arith.constant 0 : i32
    %c0_i32_0 = arith.constant 0 : i32
    %c0_i32_1 = arith.constant 0 : i32
    return %c0_i32, %c0_i32_0 : i32, i32
  }
  func.func @transform_4(%arg0: i32) -> (i32, i32) {
    %c0_i32 = arith.constant 0 : i32
    %c0_i32_0 = arith.constant 0 : i32
    %c0_i32_1 = arith.constant 0 : i32
    return %c0_i32, %c0_i32_0 : i32, i32
  }
  func.func @transform_5(%arg0: i32) -> (i32, i32) {
    %c0_i32 = arith.constant 0 : i32
    %c0_i32_0 = arith.constant 0 : i32
    %c0_i32_1 = arith.constant 0 : i32
    return %c0_i32, %c0_i32_0 : i32, i32
  }
  func.func @transform_6(%arg0: i32) -> (i32, i32) {
    %c0_i32 = arith.constant 0 : i32
    %c0_i32_0 = arith.constant 0 : i32
    %c0_i32_1 = arith.constant 0 : i32
    return %c0_i32, %c0_i32_0 : i32, i32
  }
  func.func @transform_7(%arg0: i32) -> (i32, i32) {
    %c0_i32 = arith.constant 0 : i32
    %c0_i32_0 = arith.constant 0 : i32
    %c0_i32_1 = arith.constant 0 : i32
    return %c0_i32, %c0_i32_0 : i32, i32
  }
  func.func @transform_8(%arg0: i32) -> (i32, i32) {
    %c0_i32 = arith.constant 0 : i32
    %c0_i32_0 = arith.constant 0 : i32
    return %arg0, %c0_i32 : i32, i32
  }
  func.func @transform_9(%arg0: i32) -> (i32, i32) {
    %c0_i32 = arith.constant 0 : i32
    %c0_i32_0 = arith.constant 0 : i32
    return %arg0, %c0_i32 : i32, i32
  }
}

module attributes {stable_mosaic.version = 11 : i64} {
  func.func @_gcn_layer_kernel(%arg0: i32, %arg1: memref<128x128xbf16, #tpu.memory_space<vmem>>, %arg2: memref<128x128xbf16, #tpu.memory_space<vmem>>, %arg3: memref<128x128xbf16, #tpu.memory_space<vmem>>, %arg4: memref<1x128xf32, #tpu.memory_space<vmem>>, %arg5: memref<128x128xbf16, #tpu.memory_space<vmem>>) attributes {dimension_semantics = [#tpu.dimension_semantics<parallel>], iteration_bounds = array<i64: 1>, scalar_prefetch = 0 : i64, scratch_operands = 0 : i64, tpu.core_type = #tpu.core_type<tc>, window_params = [{transform_indices = @transform_0, window_bounds = array<i64: 128, 128>}, {pipeline_mode = #tpu.pipeline_mode<synchronous>, transform_indices = @transform_1, window_bounds = array<i64: 128, 128>}, {pipeline_mode = #tpu.pipeline_mode<synchronous>, transform_indices = @transform_2, window_bounds = array<i64: 128, 128>}, {pipeline_mode = #tpu.pipeline_mode<synchronous>, transform_indices = @transform_3, window_bounds = array<i64: 1, 128>}, {transform_indices = @transform_4, window_bounds = array<i64: 128, 128>}]} {
    %c0 = arith.constant 0 : index
    %c0_0 = arith.constant 0 : index
    %0 = vector.load %arg1[%c0, %c0_0] : memref<128x128xbf16, #tpu.memory_space<vmem>>, vector<128x128xbf16>
    %c0_1 = arith.constant 0 : index
    %c0_2 = arith.constant 0 : index
    %1 = vector.load %arg2[%c0_1, %c0_2] : memref<128x128xbf16, #tpu.memory_space<vmem>>, vector<128x128xbf16>
    %cst = arith.constant dense<0.000000e+00> : vector<128x128xf32>
    %2 = tpu.matmul %0, %1, %cst {dimension_numbers = #tpu.dot_dimension_numbers<[1], [0], [0], [1], [0, 0, 1, 1], [], []>} : vector<128x128xbf16>, vector<128x128xbf16>, vector<128x128xf32> -> vector<128x128xf32>
    %3 = arith.truncf %2 : vector<128x128xf32> to vector<128x128xbf16>
    %c0_3 = arith.constant 0 : index
    %c0_4 = arith.constant 0 : index
    %4 = vector.load %arg3[%c0_3, %c0_4] : memref<128x128xbf16, #tpu.memory_space<vmem>>, vector<128x128xbf16>
    %cst_5 = arith.constant dense<0.000000e+00> : vector<128x128xf32>
    %5 = tpu.matmul %3, %4, %cst_5 {dimension_numbers = #tpu.dot_dimension_numbers<[1], [0], [0], [1], [0, 0, 1, 1], [], []>} : vector<128x128xbf16>, vector<128x128xbf16>, vector<128x128xf32> -> vector<128x128xf32>
    %c0_6 = arith.constant 0 : index
    %c0_7 = arith.constant 0 : index
    %6 = vector.load %arg4[%c0_6, %c0_7] : memref<1x128xf32, #tpu.memory_space<vmem>>, vector<1x128xf32>
    %7 = vector.broadcast %6 : vector<1x128xf32> to vector<128x128xf32>
    %8 = arith.addf %5, %7 : vector<128x128xf32>
    %cst_8 = arith.constant 0.000000e+00 : f32
    %9 = vector.broadcast %cst_8 : f32 to vector<128x128xf32>
    %10 = arith.maximumf %8, %9 : vector<128x128xf32>
    %11 = arith.truncf %10 : vector<128x128xf32> to vector<128x128xbf16>
    %c0_9 = arith.constant 0 : index
    %c0_10 = arith.constant 0 : index
    %12 = vector.load %arg5[%c0_9, %c0_10] : memref<128x128xbf16, #tpu.memory_space<vmem>>, vector<128x128xbf16>
    tpu.vector_store %arg5[%c0_9, %c0_10], %11 {strides = array<i32>} : memref<128x128xbf16, #tpu.memory_space<vmem>>, vector<128x128xbf16>,
    return
  }
  func.func @transform_0(%arg0: i32) -> (i32, i32) {
    %c0_i32 = arith.constant 0 : i32
    %c0_i32_0 = arith.constant 0 : i32
    return %arg0, %c0_i32 : i32, i32
  }
  func.func @transform_1(%arg0: i32) -> (i32, i32) {
    %c0_i32 = arith.constant 0 : i32
    %c0_i32_0 = arith.constant 0 : i32
    %c0_i32_1 = arith.constant 0 : i32
    return %c0_i32, %c0_i32_0 : i32, i32
  }
  func.func @transform_2(%arg0: i32) -> (i32, i32) {
    %c0_i32 = arith.constant 0 : i32
    %c0_i32_0 = arith.constant 0 : i32
    %c0_i32_1 = arith.constant 0 : i32
    return %c0_i32, %c0_i32_0 : i32, i32
  }
  func.func @transform_3(%arg0: i32) -> (i32, i32) {
    %c0_i32 = arith.constant 0 : i32
    %c0_i32_0 = arith.constant 0 : i32
    %c0_i32_1 = arith.constant 0 : i32
    return %c0_i32, %c0_i32_0 : i32, i32
  }
  func.func @transform_4(%arg0: i32) -> (i32, i32) {
    %c0_i32 = arith.constant 0 : i32
    %c0_i32_0 = arith.constant 0 : i32
    return %arg0, %c0_i32 : i32, i32
  }
}

</mosaic_0001>

<bundles_post_ra>
// kernel: cl_model_forward_padded.4
= control target key start
LH: loop header
LB: loop body
LE: loop exit
PB: predicated region body
PF: predicated region fallthrough
CT: control target
= control target key end

     0   :  { %s867_s1 = inlined_call_operand.vmem [shape: bf16[128,128], index: 1, kind: input, shape index: {}]   ;;  %s868_s0 = inlined_call_operand.vmem [shape: bf16[128,128], index: 0, kind: input, shape index: {}]   ;;  %s869_s2 = inlined_call_operand.vmem [shape: bf16[128,128], index: 2, kind: input, shape index: {}]   ;;  %s870_s3 = inlined_call_operand.vmem [shape: f32[1,128], index: 3, kind: input, shape index: {}]   ;;  %s871_s4 = inlined_call_operand.vmem [shape: bf16[128,128], index: 4, kind: output, shape index: {}]  }
   0x1   :  { %v719_v0 = vld [vmem:[%s867_s1] sm:$0xff]   ;;  %v720_v1 = vld [vmem:[%s867_s1 + $0x8] sm:$0xff]   ;;  %v721_v2 = vld [vmem:[%s867_s1 + $0x10] sm:$0xff]  }
   0x2   :  { %655 = vmatprep.subr.bf16.mxu0 %v719_v0  ;;  %v722_v3 = vld [vmem:[%s867_s1 + $0x18] sm:$0xff]   ;;  %v727_v4 = vld [vmem:[%s868_s0] sm:$0xff]   ;;  %v724_v6 = vld [vmem:[%s867_s1 + $0x28] sm:$0xff]  }
   0x3   :  { %656 = vmatpush3.bf16.msra.mxu0 %v719_v0  ;;  %671 = vmatprep.mubr.bf16.mxu0 %v727_v4  ;;  %v723_v5 = vld [vmem:[%s867_s1 + $0x20] sm:$0xff]   ;;  %v736_v8 = vld [vmem:[%s869_s2 + $0x8] sm:$0xff]   ;;  %v725_v9 = vld [vmem:[%s867_s1 + $0x30] sm:$0xff]  }
   0x4   :  { %657 = vmatprep.subr.bf16.mxu0 %v720_v1  ;;  %v735_v7 = vld [vmem:[%s869_s2] sm:$0xff]   ;;  %v737_v10 = vld [vmem:[%s869_s2 + $0x10] sm:$0xff]   ;;  %v726_v11 = vld [vmem:[%s867_s1 + $0x38] sm:$0xff]  }
   0x5   :  { %687 = vmatprep.subr.bf16.mxu1 %v735_v7  ;;  %v738_v12 = vld [vmem:[%s869_s2 + $0x18] sm:$0xff]   ;;  %v739_v13 = vld [vmem:[%s869_s2 + $0x20] sm:$0xff]   ;;  %v728_v14 = vld [vmem:[%s868_s0 + $0x8] sm:$0xff]  }
   0x6   :  { %688 = vmatpush3.bf16.msra.mxu1 %v735_v7  ;;  %v729_v15 = vld [vmem:[%s868_s0 + $0x10] sm:$0xff]   ;;  %v740_v16 = vld [vmem:[%s869_s2 + $0x28] sm:$0xff]   ;;  %v730_v18 = vld [vmem:[%s868_s0 + $0x18] sm:$0xff]  }
   0x7   :  { %658 = vmatpush3.bf16.msra.mxu0 %v720_v1  ;;  %689 = vmatprep.subr.bf16.mxu1 %v736_v8  ;;  %v741_v17 = vld [vmem:[%s869_s2 + $0x30] sm:$0xff]   ;;  %v731_v19 = vld [vmem:[%s868_s0 + $0x20] sm:$0xff]   ;;  %v732_v20 = vld [vmem:[%s868_s0 + $0x28] sm:$0xff]  }
   0x8   :  { %659 = vmatprep.subr.bf16.mxu0 %v721_v2  ;;  %v733_v21 = vld [vmem:[%s868_s0 + $0x30] sm:$0xff]   ;;  %v734_v22 = vld [vmem:[%s868_s0 + $0x38] sm:$0xff]   ;;  %v535_v48 = vld [vmem:[%s870_s3] ss:$0 sm:$0xff] }
   0x9   :  { %v742_v23 = vld [vmem:[%s869_s2 + $0x38] sm:$0xff]  }
   0xa   :  { %690 = vmatpush3.bf16.msra.mxu1 %v736_v8 }
   0xb   :  { %660 = vmatpush3.bf16.msra.mxu0 %v721_v2  ;;  %691 = vmatprep.subr.bf16.mxu1 %v737_v10 }
   0xc   :  { %661 = vmatprep.subr.bf16.mxu0 %v722_v3 }
   0xe   :  { %692 = vmatpush3.bf16.msra.mxu1 %v737_v10 }
   0xf   :  { %662 = vmatpush3.bf16.msra.mxu0 %v722_v3  ;;  %693 = vmatprep.subr.bf16.mxu1 %v738_v12 }
  0x10   :  { %663 = vmatprep.subr.bf16.mxu0 %v723_v5 }
  0x12   :  { %694 = vmatpush3.bf16.msra.mxu1 %v738_v12 }
  0x13   :  { %664 = vmatpush3.bf16.msra.mxu0 %v723_v5  ;;  %695 = vmatprep.subr.bf16.mxu1 %v739_v13 }
  0x14   :  { %665 = vmatprep.subr.bf16.mxu0 %v724_v6 }
  0x16   :  { %696 = vmatpush3.bf16.msra.mxu1 %v739_v13 }
  0x17   :  { %666 = vmatpush3.bf16.msra.mxu0 %v724_v6  ;;  %697 = vmatprep.subr.bf16.mxu1 %v740_v16 }
  0x18   :  { %667 = vmatprep.subr.bf16.mxu0 %v725_v9 }
  0x1a   :  { %698 = vmatpush3.bf16.msra.mxu1 %v740_v16 }
  0x1b   :  { %668 = vmatpush3.bf16.msra.mxu0 %v725_v9  ;;  %699 = vmatprep.subr.bf16.mxu1 %v741_v17 }
  0x1c   :  { %669 = vmatprep.subr.bf16.mxu0 %v726_v11 }
  0x1e   :  { %700 = vmatpush3.bf16.msra.mxu1 %v741_v17 }
  0x1f   :  { %670 = vmatpush3.bf16.msra.mxu0 %v726_v11  ;;  %701 = vmatprep.subr.bf16.mxu1 %v742_v23 }
  0x22   :  { %672 = vmatmul.mubr.bf16.vlgmr.msra.gmra.mrb[0].mxu0 %v728_v14  ;;  %702 = vmatpush3.bf16.msra.mxu1 %v742_v23 }
  0x23   :  { %675 = vmatprep.mubr.bf16.mxu0 %v729_v15 }
  0x2a   :  { %676 = vmatmul.mubr.bf16.gmra.mrb[4].mxu0 %v730_v18 }
  0x2b   :  { %679 = vmatprep.mubr.bf16.mxu0 %v731_v19 }
  0x32   :  { %680 = vmatmul.mubr.bf16.gmra.mrb[8].mxu0 %v732_v20 }
  0x33   :  { %683 = vmatprep.mubr.bf16.mxu0 %v733_v21 }
  0x3a   :  { %684 = vmatmul.mubr.bf16.gmra.mrb[12].mxu0 %v734_v22 }
  0xf5   :  { %v673_v24 = vpop.f32.mrb[0].mxu0 }
  0xf6   :  { %v180_v25 = vpop.f32.mrb[1].mxu0 }
  0xf7   :  { %v674_v26 = vpop.f32.mrb[2].mxu0 }
  0xf8   :  { %v244_v27 = vpack.c.bf16 %v674_v26, %v673_v24  ;;  %v183_v28 = vpop.f32.mrb[3].mxu0 }
  0xf9   :  { %v243_v29 = vpack.c.bf16 %v183_v28, %v180_v25 }
  0xfb   :  { %703 = vmatprep.mubr.bf16.mxu1 %v243_v29 }
  0xfc   :  { %704 = vmatmul.mubr.bf16.vlgmr.msra.gmra.mrb[0].mxu1 %v244_v27 }
  0xfd   :  { %v677_v30 = vpop.f32.mrb[4].mxu0 }
  0xfe   :  { %v196_v31 = vpop.f32.mrb[5].mxu0 }
  0xff   :  { %v678_v32 = vpop.f32.mrb[6].mxu0 }
 0x100   :  { %v246_v33 = vpack.c.bf16 %v678_v32, %v677_v30  ;;  %v199_v34 = vpop.f32.mrb[7].mxu0 }
 0x101   :  { %v245_v35 = vpack.c.bf16 %v199_v34, %v196_v31 }
 0x103   :  { %707 = vmatprep.mubr.bf16.mxu1 %v245_v35 }
 0x104   :  { %708 = vmatmul.mubr.bf16.gmra.mrb[4].mxu1 %v246_v33 }
 0x105   :  { %v681_v36 = vpop.f32.mrb[8].mxu0 }
 0x106   :  { %v212_v37 = vpop.f32.mrb[9].mxu0 }
 0x107   :  { %v682_v38 = vpop.f32.mrb[10].mxu0 }
 0x108   :  { %v248_v39 = vpack.c.bf16 %v682_v38, %v681_v36  ;;  %v215_v40 = vpop.f32.mrb[11].mxu0 }
 0x109   :  { %v247_v41 = vpack.c.bf16 %v215_v40, %v212_v37 }
 0x10b   :  { %711 = vmatprep.mubr.bf16.mxu1 %v247_v41 }
 0x10c   :  { %712 = vmatmul.mubr.bf16.gmra.mrb[8].mxu1 %v248_v39 }
 0x10d   :  { %v685_v42 = vpop.f32.mrb[12].mxu0 }
 0x10e   :  { %v228_v43 = vpop.f32.mrb[13].mxu0 }
 0x10f   :  { %v686_v44 = vpop.f32.mrb[14].mxu0 }
 0x110   :  { %v250_v45 = vpack.c.bf16 %v686_v44, %v685_v42  ;;  %v231_v46 = vpop.f32.mrb[15].mxu0 }
 0x111   :  { %v249_v47 = vpack.c.bf16 %v231_v46, %v228_v43 }
 0x113   :  { %715 = vmatprep.mubr.bf16.mxu1 %v249_v47 }
 0x114   :  { %716 = vmatmul.mubr.bf16.gmra.mrb[12].mxu1 %v250_v45 }
 0x1cf   :  { %v705_v49 = vpop.f32.mrb[0].mxu1 }
 0x1d0   :  { %v365_v50 = vadd.f32 %v705_v49, %v535_v48  ;;  %v356_v51 = vpop.f32.mrb[1].mxu1 }
 0x1d1   :  { %v357_v52 = vadd.f32 %v535_v48, %v356_v51  ;;  %v706_v53 = vpop.f32.mrb[2].mxu1 }
 0x1d2   :  { %v368_v54 = vadd.f32 %v706_v53, %v535_v48  ;;  %v359_v55 = vpop.f32.mrb[3].mxu1  ;;  %v421_v57 = vmax.f32 %v365_v50, 0.0 }
 0x1d3   :  { %v360_v56 = vadd.f32 %v535_v48, %v359_v55  ;;  %v419_v59 = vmax.f32 %v357_v52, 0.0 }
 0x1d4   :  { %v422_v58 = vmax.f32 %v368_v54, 0.0 }
 0x1d5   :  { %v420_v60 = vmax.f32 %v360_v56, 0.0 }
 0x1d6   :  { %v584_v61 = vpack.c.bf16 %v422_v58, %v421_v57 }
 0x1d7   :  { %v579_v62 = vpack.c.bf16 %v420_v60, %v419_v59  ;;  %v709_v63 = vpop.f32.mrb[4].mxu1 }
 0x1d8   :  { %616 = vst [vmem:[%s871_s4 + $0x8] sm:$0xff] %v584_v61   ;;  %v381_v0 = vadd.f32 %v709_v63, %v535_v48  ;;  %v372_v1 = vpop.f32.mrb[5].mxu1 }
 0x1d9   :  { %580 = vst [vmem:[%s871_s4] sm:$0xff] %v579_v62   ;;  %v373_v2 = vadd.f32 %v535_v48, %v372_v1  ;;  %v710_v3 = vpop.f32.mrb[6].mxu1 }
 0x1da   :  { %v384_v4 = vadd.f32 %v710_v3, %v535_v48  ;;  %v375_v5 = vpop.f32.mrb[7].mxu1  ;;  %v425_v7 = vmax.f32 %v381_v0, 0.0 }
 0x1db   :  { %v376_v6 = vadd.f32 %v535_v48, %v375_v5  ;;  %v423_v9 = vmax.f32 %v373_v2, 0.0 }
 0x1dc   :  { %v426_v8 = vmax.f32 %v384_v4, 0.0 }
 0x1dd   :  { %v424_v10 = vmax.f32 %v376_v6, 0.0 }
 0x1de   :  { %v594_v11 = vpack.c.bf16 %v426_v8, %v425_v7 }
 0x1df   :  { %v589_v12 = vpack.c.bf16 %v424_v10, %v423_v9  ;;  %v713_v13 = vpop.f32.mrb[8].mxu1 }
 0x1e0   :  { %618 = vst [vmem:[%s871_s4 + $0x18] sm:$0xff] %v594_v11   ;;  %v397_v14 = vadd.f32 %v713_v13, %v535_v48  ;;  %v388_v15 = vpop.f32.mrb[9].mxu1 }
 0x1e1   :  { %617 = vst [vmem:[%s871_s4 + $0x10] sm:$0xff] %v589_v12   ;;  %v389_v16 = vadd.f32 %v535_v48, %v388_v15  ;;  %v714_v17 = vpop.f32.mrb[10].mxu1 }
 0x1e2   :  { %v400_v18 = vadd.f32 %v714_v17, %v535_v48  ;;  %v391_v19 = vpop.f32.mrb[11].mxu1  ;;  %v429_v21 = vmax.f32 %v397_v14, 0.0 }
 0x1e3   :  { %v392_v20 = vadd.f32 %v535_v48, %v391_v19  ;;  %v427_v23 = vmax.f32 %v389_v16, 0.0 }
 0x1e4   :  { %v430_v22 = vmax.f32 %v400_v18, 0.0 }
 0x1e5   :  { %v428_v24 = vmax.f32 %v392_v20, 0.0 }
 0x1e6   :  { %v604_v25 = vpack.c.bf16 %v430_v22, %v429_v21 }
 0x1e7   :  { %v599_v26 = vpack.c.bf16 %v428_v24, %v427_v23  ;;  %v717_v27 = vpop.f32.mrb[12].mxu1 }
 0x1e8   :  { %620 = vst [vmem:[%s871_s4 + $0x28] sm:$0xff] %v604_v25   ;;  %v413_v28 = vadd.f32 %v717_v27, %v535_v48  ;;  %v404_v29 = vpop.f32.mrb[13].mxu1 }
 0x1e9   :  { %619 = vst [vmem:[%s871_s4 + $0x20] sm:$0xff] %v599_v26   ;;  %v405_v30 = vadd.f32 %v535_v48, %v404_v29  ;;  %v718_v31 = vpop.f32.mrb[14].mxu1 }
 0x1ea   :  { %v416_v32 = vadd.f32 %v718_v31, %v535_v48  ;;  %v407_v33 = vpop.f32.mrb[15].mxu1  ;;  %v433_v35 = vmax.f32 %v413_v28, 0.0 }
 0x1eb   :  { %v408_v34 = vadd.f32 %v535_v48, %v407_v33  ;;  %v431_v37 = vmax.f32 %v405_v30, 0.0 }
 0x1ec   :  { %v434_v36 = vmax.f32 %v416_v32, 0.0 }
 0x1ed   :  { %v432_v38 = vmax.f32 %v408_v34, 0.0 }
 0x1ee   :  { %v614_v39 = vpack.c.bf16 %v434_v36, %v433_v35 }
 0x1ef   :  { %v609_v40 = vpack.c.bf16 %v432_v38, %v431_v37 }
 0x1f0   :  { %622 = vst [vmem:[%s871_s4 + $0x38] sm:$0xff] %v614_v39  }
 0x1f1   :  { %621 = vst [vmem:[%s871_s4 + $0x30] sm:$0xff] %v609_v40  }

// kernel: cl_model_forward_padded.3
= control target key start
LH: loop header
LB: loop body
LE: loop exit
PB: predicated region body
PF: predicated region fallthrough
CT: control target
= control target key end

     0   :  { %9 = vsyncpa [#allocation3], 0  ;;  %s970_s0 = inlined_call_operand.hbm [shape: bf16[128,128], index: 0, kind: input, shape index: {}]   ;;  %s971_s1 = inlined_call_operand.hbm [shape: bf16[128,128], index: 1, kind: input, shape index: {}]   ;;  %s972_s2 = inlined_call_operand.hbm [shape: bf16[128,128], index: 2, kind: input, shape index: {}]   ;;  %s973_s3 = inlined_call_operand.vmem [shape: f32[1,128], index: 3, kind: input, shape index: {}]   ;;  %s974_s4 = inlined_call_operand.vmem [shape: bf16[128,128], index: 4, kind: output, shape index: {}]  }
   0x1   :  { %10 = vsyncpa [#allocation5], 0  ;;  %s861_s15 = smov [#allocation4]   ;;  %s862_s17 = smov [#allocation2]  }
   0x2   :  { %s28_s16 = sshll.u32 %s861_s15, 4  ;;  %s16_s18 = sshll.u32 %s862_s17, 4  ;;  %s29_s16 = int_to_ptr.vmem [resolvable:$true] %s28_s16  ;;  %s891_s18 = int_to_ptr.vmem [resolvable:$true] %s16_s18 }
   0x3   :  { %s791_s21 = scalar_lea.hbm %s971_s1, 1024 }
   0x4   :  { %p792_p0 = scmp.ne.s32.totalorder %s971_s1, %s791_s21  ;;  %p795_p1 = scmp.lt.u32.totalorder %s791_s21, %s971_s1 }
   0x6   :  { %p797_p2 = pnand %p795_p1, %p792_p0 }
   0x8   :  { %800 = shalt.err (!%p797_p2)
}
   0x9   :  { %s801_s26 = scalar_lea.vmem %s29_s16, 1024  ;;  %p806_p4 = scmp.lt.s32.totalorder %s29_s16, %s29_s16 }
   0xa   :  { %p802_p3 = scmp.ne.s32.totalorder %s29_s16, %s801_s26  ;;  %p807_p5 = scmp.lt.s32.totalorder %s801_s26, %s801_s26 }
   0xc   :  { %p808_p6 = por %p807_p5, %p806_p4 }
   0xe   :  { %p809_p7 = pnand %p808_p6, %p802_p3 }
  0x10   :  { %812 = shalt.err (!%p809_p7)
}
  0x11   :  { %s863_s27 = smov 64   ;;  %s864_s28 = smov 4  }
  0x12   :  { %34 = dma.hbm_to_vmem [thread:$0]  %s971_s1, 1024, %s29_s16, [#allocation5], %s863_s27, %s863_s27, %s864_s28  }
  0x13   :  { %s813_s7 = scalar_lea.hbm %s970_s0, 1024 }
  0x14   :  { %p814_p8 = scmp.ne.s32.totalorder %s970_s0, %s813_s7  ;;  %p817_p9 = scmp.lt.u32.totalorder %s813_s7, %s970_s0 }
  0x16   :  { %p819_p10 = pnand %p817_p9, %p814_p8 }
  0x18   :  { %822 = shalt.err (!%p819_p10)
}
  0x19   :  { %s823_s12 = scalar_lea.vmem %s891_s18, 1024  ;;  %p828_p12 = scmp.lt.s32.totalorder %s891_s18, %s891_s18 }
  0x1a   :  { %p824_p11 = scmp.ne.s32.totalorder %s891_s18, %s823_s12  ;;  %p829_p13 = scmp.lt.s32.totalorder %s823_s12, %s823_s12 }
  0x1c   :  { %p830_p0 = por %p829_p13, %p828_p12 }
  0x1e   :  { %p831_p1 = pnand %p830_p0, %p824_p11 }
  0x20   :  { %834 = shalt.err (!%p831_p1)
}
  0x21   :  { %22 = dma.hbm_to_vmem [thread:$0]  %s970_s0, 1024, %s891_s18, [#allocation3], %s863_s27, %s863_s27, %s864_s28  }
  0x22   :  { %s865_s14 = smov [#allocation6]   ;;  %s835_s19 = scalar_lea.hbm %s972_s2, 1024 }
  0x23   :  { %s40_s15 = sshll.u32 %s865_s14, 4  ;;  %p836_p2 = scmp.ne.s32.totalorder %s972_s2, %s835_s19  ;;  %s41_s15 = int_to_ptr.vmem [resolvable:$true] %s40_s15 }
  0x24   :  { %p839_p3 = scmp.lt.u32.totalorder %s835_s19, %s972_s2 }
  0x26   :  { %p841_p4 = pnand %p839_p3, %p836_p2 }
  0x28   :  { %844 = shalt.err (!%p841_p4)
}
  0x29   :  { %s845_s24 = scalar_lea.vmem %s41_s15, 1024  ;;  %p850_p6 = scmp.lt.s32.totalorder %s41_s15, %s41_s15 }
  0x2a   :  { %p846_p5 = scmp.ne.s32.totalorder %s41_s15, %s845_s24  ;;  %p851_p7 = scmp.lt.s32.totalorder %s845_s24, %s845_s24 }
  0x2c   :  { %p852_p8 = por %p851_p7, %p850_p6 }
  0x2e   :  { %p853_p9 = pnand %p852_p8, %p846_p5 }
  0x30   :  { %856 = shalt.err (!%p853_p9)
}
  0x31   :  { %46 = dma.hbm_to_vmem [thread:$0]  %s972_s2, 1024, %s41_s15, [#allocation5], %s863_s27, %s863_s27, %s864_s28  }
  0x32   :  { %857 = dma.done.wait [#allocation3], 1024  }
  0x33   :  { %858 = vsyncadd [#allocation3], 4294966272 }
  0x34   :  { %859 = dma.done.wait [#allocation5], 2048  }
  0x35   :  { %860 = vsyncadd [#allocation5], 4294965248  ;;  %v767_v0 = vld [vmem:[#allocation4] sm:$0xff]   ;;  %v768_v1 = vld [vmem:[#allocation4 + $0x8] sm:$0xff]  }
  0x36   :  { %698 = vmatprep.subr.bf16.mxu0 %v767_v0  ;;  %v769_v2 = vld [vmem:[#allocation4 + $0x10] sm:$0xff]   ;;  %v770_v3 = vld [vmem:[#allocation4 + $0x18] sm:$0xff]   ;;  %v775_v4 = vld [vmem:[#allocation2] sm:$0xff]  }
  0x37   :  { %699 = vmatpush3.bf16.msra.mxu0 %v767_v0  ;;  %714 = vmatprep.mubr.bf16.mxu0 %v775_v4  ;;  %v771_v5 = vld [vmem:[#allocation4 + $0x20] sm:$0xff]   ;;  %v772_v6 = vld [vmem:[#allocation4 + $0x28] sm:$0xff]   ;;  %v773_v9 = vld [vmem:[#allocation4 + $0x30] sm:$0xff]  }
  0x38   :  { %700 = vmatprep.subr.bf16.mxu0 %v768_v1  ;;  %v783_v7 = vld [vmem:[#allocation6] sm:$0xff]   ;;  %v784_v8 = vld [vmem:[#allocation6 + $0x8] sm:$0xff]   ;;  %v785_v10 = vld [vmem:[#allocation6 + $0x10] sm:$0xff]  }
  0x39   :  { %730 = vmatprep.subr.bf16.mxu1 %v783_v7  ;;  %v774_v11 = vld [vmem:[#allocation4 + $0x38] sm:$0xff]   ;;  %v787_v13 = vld [vmem:[#allocation6 + $0x20] sm:$0xff]   ;;  %v776_v14 = vld [vmem:[#allocation2 + $0x8] sm:$0xff]  }
  0x3a   :  { %731 = vmatpush3.bf16.msra.mxu1 %v783_v7  ;;  %v786_v12 = vld [vmem:[#allocation6 + $0x18] sm:$0xff]   ;;  %v777_v15 = vld [vmem:[#allocation2 + $0x10] sm:$0xff]   ;;  %v788_v16 = vld [vmem:[#allocation6 + $0x28] sm:$0xff]  }
  0x3b   :  { %701 = vmatpush3.bf16.msra.mxu0 %v768_v1  ;;  %732 = vmatprep.subr.bf16.mxu1 %v784_v8  ;;  %v789_v17 = vld [vmem:[#allocation6 + $0x30] sm:$0xff]   ;;  %v778_v18 = vld [vmem:[#allocation2 + $0x18] sm:$0xff]   ;;  %v779_v19 = vld [vmem:[#allocation2 + $0x20] sm:$0xff]  }
  0x3c   :  { %702 = vmatprep.subr.bf16.mxu0 %v769_v2  ;;  %v780_v20 = vld [vmem:[#allocation2 + $0x28] sm:$0xff]   ;;  %v781_v21 = vld [vmem:[#allocation2 + $0x30] sm:$0xff]   ;;  %v782_v22 = vld [vmem:[#allocation2 + $0x38] sm:$0xff]  }
  0x3d   :  { %v790_v23 = vld [vmem:[#allocation6 + $0x38] sm:$0xff]   ;;  %v578_v48 = vld [vmem:[%s973_s3] ss:$0 sm:$0xff] }
  0x3e   :  { %733 = vmatpush3.bf16.msra.mxu1 %v784_v8 }
  0x3f   :  { %703 = vmatpush3.bf16.msra.mxu0 %v769_v2  ;;  %734 = vmatprep.subr.bf16.mxu1 %v785_v10 }
  0x40   :  { %704 = vmatprep.subr.bf16.mxu0 %v770_v3 }
  0x42   :  { %735 = vmatpush3.bf16.msra.mxu1 %v785_v10 }
  0x43   :  { %705 = vmatpush3.bf16.msra.mxu0 %v770_v3  ;;  %736 = vmatprep.subr.bf16.mxu1 %v786_v12 }
  0x44   :  { %706 = vmatprep.subr.bf16.mxu0 %v771_v5 }
  0x46   :  { %737 = vmatpush3.bf16.msra.mxu1 %v786_v12 }
  0x47   :  { %707 = vmatpush3.bf16.msra.mxu0 %v771_v5  ;;  %738 = vmatprep.subr.bf16.mxu1 %v787_v13 }
  0x48   :  { %708 = vmatprep.subr.bf16.mxu0 %v772_v6 }
  0x4a   :  { %739 = vmatpush3.bf16.msra.mxu1 %v787_v13 }
  0x4b   :  { %709 = vmatpush3.bf16.msra.mxu0 %v772_v6  ;;  %740 = vmatprep.subr.bf16.mxu1 %v788_v16 }
  0x4c   :  { %710 = vmatprep.subr.bf16.mxu0 %v773_v9 }
  0x4e   :  { %741 = vmatpush3.bf16.msra.mxu1 %v788_v16 }
  0x4f   :  { %711 = vmatpush3.bf16.msra.mxu0 %v773_v9  ;;  %742 = vmatprep.subr.bf16.mxu1 %v789_v17 }
  0x50   :  { %712 = vmatprep.subr.bf16.mxu0 %v774_v11 }
  0x52   :  { %743 = vmatpush3.bf16.msra.mxu1 %v789_v17 }
  0x53   :  { %713 = vmatpush3.bf16.msra.mxu0 %v774_v11  ;;  %744 = vmatprep.subr.bf16.mxu1 %v790_v23 }
  0x56   :  { %715 = vmatmul.mubr.bf16.vlgmr.msra.gmra.mrb[0].mxu0 %v776_v14  ;;  %745 = vmatpush3.bf16.msra.mxu1 %v790_v23 }
  0x57   :  { %718 = vmatprep.mubr.bf16.mxu0 %v777_v15 }
  0x5e   :  { %719 = vmatmul.mubr.bf16.gmra.mrb[4].mxu0 %v778_v18 }
  0x5f   :  { %722 = vmatprep.mubr.bf16.mxu0 %v779_v19 }
  0x66   :  { %723 = vmatmul.mubr.bf16.gmra.mrb[8].mxu0 %v780_v20 }
  0x67   :  { %726 = vmatprep.mubr.bf16.mxu0 %v781_v21 }
  0x6e   :  { %727 = vmatmul.mubr.bf16.gmra.mrb[12].mxu0 %v782_v22 }
 0x129   :  { %v716_v24 = vpop.f32.mrb[0].mxu0 }
 0x12a   :  { %v221_v25 = vpop.f32.mrb[1].mxu0 }
 0x12b   :  { %v717_v26 = vpop.f32.mrb[2].mxu0 }
 0x12c   :  { %v285_v27 = vpack.c.bf16 %v717_v26, %v716_v24  ;;  %v224_v28 = vpop.f32.mrb[3].mxu0 }
 0x12d   :  { %v284_v29 = vpack.c.bf16 %v224_v28, %v221_v25 }
 0x12f   :  { %746 = vmatprep.mubr.bf16.mxu1 %v284_v29 }
 0x130   :  { %747 = vmatmul.mubr.bf16.vlgmr.msra.gmra.mrb[0].mxu1 %v285_v27 }
 0x131   :  { %v720_v30 = vpop.f32.mrb[4].mxu0 }
 0x132   :  { %v237_v31 = vpop.f32.mrb[5].mxu0 }
 0x133   :  { %v721_v32 = vpop.f32.mrb[6].mxu0 }
 0x134   :  { %v287_v33 = vpack.c.bf16 %v721_v32, %v720_v30  ;;  %v240_v34 = vpop.f32.mrb[7].mxu0 }
 0x135   :  { %v286_v35 = vpack.c.bf16 %v240_v34, %v237_v31 }
 0x137   :  { %750 = vmatprep.mubr.bf16.mxu1 %v286_v35 }
 0x138   :  { %751 = vmatmul.mubr.bf16.gmra.mrb[4].mxu1 %v287_v33 }
 0x139   :  { %v724_v36 = vpop.f32.mrb[8].mxu0 }
 0x13a   :  { %v253_v37 = vpop.f32.mrb[9].mxu0 }
 0x13b   :  { %v725_v38 = vpop.f32.mrb[10].mxu0 }
 0x13c   :  { %v289_v39 = vpack.c.bf16 %v725_v38, %v724_v36  ;;  %v256_v40 = vpop.f32.mrb[11].mxu0 }
 0x13d   :  { %v288_v41 = vpack.c.bf16 %v256_v40, %v253_v37 }
 0x13f   :  { %754 = vmatprep.mubr.bf16.mxu1 %v288_v41 }
 0x140   :  { %755 = vmatmul.mubr.bf16.gmra.mrb[8].mxu1 %v289_v39 }
 0x141   :  { %v728_v42 = vpop.f32.mrb[12].mxu0 }
 0x142   :  { %v269_v43 = vpop.f32.mrb[13].mxu0 }
 0x143   :  { %v729_v44 = vpop.f32.mrb[14].mxu0 }
 0x144   :  { %v291_v45 = vpack.c.bf16 %v729_v44, %v728_v42  ;;  %v272_v46 = vpop.f32.mrb[15].mxu0 }
 0x145   :  { %v290_v47 = vpack.c.bf16 %v272_v46, %v269_v43 }
 0x147   :  { %758 = vmatprep.mubr.bf16.mxu1 %v290_v47 }
 0x148   :  { %759 = vmatmul.mubr.bf16.gmra.mrb[12].mxu1 %v291_v45 }
 0x203   :  { %v748_v49 = vpop.f32.mrb[0].mxu1 }
 0x204   :  { %v406_v50 = vadd.f32 %v748_v49, %v578_v48  ;;  %v397_v51 = vpop.f32.mrb[1].mxu1 }
 0x205   :  { %v398_v52 = vadd.f32 %v578_v48, %v397_v51  ;;  %v749_v53 = vpop.f32.mrb[2].mxu1 }
 0x206   :  { %v409_v54 = vadd.f32 %v749_v53, %v578_v48  ;;  %v400_v55 = vpop.f32.mrb[3].mxu1  ;;  %v462_v57 = vmax.f32 %v406_v50, 0.0 }
 0x207   :  { %v401_v56 = vadd.f32 %v578_v48, %v400_v55  ;;  %v460_v59 = vmax.f32 %v398_v52, 0.0 }
 0x208   :  { %v463_v58 = vmax.f32 %v409_v54, 0.0 }
 0x209   :  { %v461_v60 = vmax.f32 %v401_v56, 0.0 }
 0x20a   :  { %v627_v61 = vpack.c.bf16 %v463_v58, %v462_v57 }
 0x20b   :  { %v622_v62 = vpack.c.bf16 %v461_v60, %v460_v59  ;;  %v752_v63 = vpop.f32.mrb[4].mxu1 }
 0x20c   :  { %659 = vst [vmem:[%s974_s4 + $0x8] sm:$0xff] %v627_v61   ;;  %v422_v0 = vadd.f32 %v752_v63, %v578_v48  ;;  %v413_v1 = vpop.f32.mrb[5].mxu1 }
 0x20d   :  { %623 = vst [vmem:[%s974_s4] sm:$0xff] %v622_v62   ;;  %v414_v2 = vadd.f32 %v578_v48, %v413_v1  ;;  %v753_v3 = vpop.f32.mrb[6].mxu1 }
 0x20e   :  { %v425_v4 = vadd.f32 %v753_v3, %v578_v48  ;;  %v416_v5 = vpop.f32.mrb[7].mxu1  ;;  %v466_v7 = vmax.f32 %v422_v0, 0.0 }
 0x20f   :  { %v417_v6 = vadd.f32 %v578_v48, %v416_v5  ;;  %v464_v9 = vmax.f32 %v414_v2, 0.0 }
 0x210   :  { %v467_v8 = vmax.f32 %v425_v4, 0.0 }
 0x211   :  { %v465_v10 = vmax.f32 %v417_v6, 0.0 }
 0x212   :  { %v637_v11 = vpack.c.bf16 %v467_v8, %v466_v7 }
 0x213   :  { %v632_v12 = vpack.c.bf16 %v465_v10, %v464_v9  ;;  %v756_v13 = vpop.f32.mrb[8].mxu1 }
 0x214   :  { %661 = vst [vmem:[%s974_s4 + $0x18] sm:$0xff] %v637_v11   ;;  %v438_v14 = vadd.f32 %v756_v13, %v578_v48  ;;  %v429_v15 = vpop.f32.mrb[9].mxu1 }
 0x215   :  { %660 = vst [vmem:[%s974_s4 + $0x10] sm:$0xff] %v632_v12   ;;  %v430_v16 = vadd.f32 %v578_v48, %v429_v15  ;;  %v757_v17 = vpop.f32.mrb[10].mxu1 }
 0x216   :  { %v441_v18 = vadd.f32 %v757_v17, %v578_v48  ;;  %v432_v19 = vpop.f32.mrb[11].mxu1  ;;  %v470_v21 = vmax.f32 %v438_v14, 0.0 }
 0x217   :  { %v433_v20 = vadd.f32 %v578_v48, %v432_v19  ;;  %v468_v23 = vmax.f32 %v430_v16, 0.0 }
 0x218   :  { %v471_v22 = vmax.f32 %v441_v18, 0.0 }
 0x219   :  { %v469_v24 = vmax.f32 %v433_v20, 0.0 }
 0x21a   :  { %v647_v25 = vpack.c.bf16 %v471_v22, %v470_v21 }
 0x21b   :  { %v642_v26 = vpack.c.bf16 %v469_v24, %v468_v23  ;;  %v760_v27 = vpop.f32.mrb[12].mxu1 }
 0x21c   :  { %663 = vst [vmem:[%s974_s4 + $0x28] sm:$0xff] %v647_v25   ;;  %v454_v28 = vadd.f32 %v760_v27, %v578_v48  ;;  %v445_v29 = vpop.f32.mrb[13].mxu1 }
 0x21d   :  { %662 = vst [vmem:[%s974_s4 + $0x20] sm:$0xff] %v642_v26   ;;  %v446_v30 = vadd.f32 %v578_v48, %v445_v29  ;;  %v761_v31 = vpop.f32.mrb[14].mxu1 }
 0x21e   :  { %v457_v32 = vadd.f32 %v761_v31, %v578_v48  ;;  %v448_v33 = vpop.f32.mrb[15].mxu1  ;;  %v474_v35 = vmax.f32 %v454_v28, 0.0 }
 0x21f   :  { %v449_v34 = vadd.f32 %v578_v48, %v448_v33  ;;  %v472_v37 = vmax.f32 %v446_v30, 0.0 }
 0x220   :  { %v475_v36 = vmax.f32 %v457_v32, 0.0 }
 0x221   :  { %v473_v38 = vmax.f32 %v449_v34, 0.0 }
 0x222   :  { %v657_v39 = vpack.c.bf16 %v475_v36, %v474_v35 }
 0x223   :  { %v652_v40 = vpack.c.bf16 %v473_v38, %v472_v37 }
 0x224   :  { %665 = vst [vmem:[%s974_s4 + $0x38] sm:$0xff] %v657_v39  }
 0x225   :  { %664 = vst [vmem:[%s974_s4 + $0x30] sm:$0xff] %v652_v40  }
 0x226   :  { %560 = vsyncpa [#allocation3], 1 }
 0x227   :  { %561 = vsyncpa [#allocation5], 1 }

// kernel: cl_model_forward_padded.5
= control target key start
LH: loop header
LB: loop body
LE: loop exit
PB: predicated region body
PF: predicated region fallthrough
CT: control target
= control target key end

     0   :  { %15 = vsyncpa [#allocation3], 0  ;;  %s1441_s0 = inlined_call_operand.vmem [shape: bf16[128,128], index: 0, kind: input, shape index: {}]   ;;  %s1442_s1 = inlined_call_operand.vmem [shape: bf16[128,128], index: 1, kind: input, shape index: {}]   ;;  %s1443_s2 = inlined_call_operand.vmem [shape: bf16[128,128], index: 2, kind: input, shape index: {}]   ;;  %s1444_s3 = inlined_call_operand.vmem [shape: f32[1,128], index: 3, kind: input, shape index: {}]   ;;  %s1445_s4 = inlined_call_operand.vmem [shape: bf16[128,128], index: 4, kind: input, shape index: {}]   ;;  %s1446_s5 = inlined_call_operand.vmem [shape: f32[1,128], index: 5, kind: input, shape index: {}]   ;;  %s1447_s6 = inlined_call_operand.vmem [shape: bf16[128,128], index: 6, kind: input, shape index: {}]   ;;  %s1448_s7 = inlined_call_operand.vmem [shape: f32[1,128], index: 7, kind: input, shape index: {}]   ;;  %s1449_s8 = inlined_call_operand.hbm [shape: f32[128,128], index: 8, kind: output, shape index: {0}]   ;;  %s1450_s9 = inlined_call_operand.hbm [shape: f32[128,128], index: 9, kind: output, shape index: {1}]  }
   0x1   :  { %v1122_v0 = vld [vmem:[%s1442_s1] sm:$0xff]   ;;  %v1123_v1 = vld [vmem:[%s1442_s1 + $0x8] sm:$0xff]   ;;  %v1124_v2 = vld [vmem:[%s1442_s1 + $0x10] sm:$0xff]  }
   0x2   :  { %990 = vmatprep.subr.bf16.mxu0 %v1122_v0  ;;  %v1125_v3 = vld [vmem:[%s1442_s1 + $0x18] sm:$0xff]   ;;  %v1130_v4 = vld [vmem:[%s1441_s0] sm:$0xff]   ;;  %v1127_v6 = vld [vmem:[%s1442_s1 + $0x28] sm:$0xff]  }
   0x3   :  { %991 = vmatpush3.bf16.msra.mxu0 %v1122_v0  ;;  %1006 = vmatprep.mubr.bf16.mxu0 %v1130_v4  ;;  %v1126_v5 = vld [vmem:[%s1442_s1 + $0x20] sm:$0xff]   ;;  %v1139_v8 = vld [vmem:[%s1443_s2 + $0x8] sm:$0xff]   ;;  %v1128_v9 = vld [vmem:[%s1442_s1 + $0x30] sm:$0xff]  }
   0x4   :  { %992 = vmatprep.subr.bf16.mxu0 %v1123_v1  ;;  %v1138_v7 = vld [vmem:[%s1443_s2] sm:$0xff]   ;;  %v1140_v10 = vld [vmem:[%s1443_s2 + $0x10] sm:$0xff]   ;;  %v1129_v11 = vld [vmem:[%s1442_s1 + $0x38] sm:$0xff]  }
   0x5   :  { %1022 = vmatprep.subr.bf16.mxu1 %v1138_v7  ;;  %v1141_v12 = vld [vmem:[%s1443_s2 + $0x18] sm:$0xff]   ;;  %v1142_v13 = vld [vmem:[%s1443_s2 + $0x20] sm:$0xff]   ;;  %v1131_v14 = vld [vmem:[%s1441_s0 + $0x8] sm:$0xff]  }
   0x6   :  { %1023 = vmatpush3.bf16.msra.mxu1 %v1138_v7  ;;  %v1132_v15 = vld [vmem:[%s1441_s0 + $0x10] sm:$0xff]   ;;  %v1143_v16 = vld [vmem:[%s1443_s2 + $0x28] sm:$0xff]  }
   0x7   :  { %993 = vmatpush3.bf16.msra.mxu0 %v1123_v1  ;;  %1024 = vmatprep.subr.bf16.mxu1 %v1139_v8 }
   0x8   :  { %994 = vmatprep.subr.bf16.mxu0 %v1124_v2 }
   0xa   :  { %1025 = vmatpush3.bf16.msra.mxu1 %v1139_v8 }
   0xb   :  { %995 = vmatpush3.bf16.msra.mxu0 %v1124_v2  ;;  %1026 = vmatprep.subr.bf16.mxu1 %v1140_v10 }
   0xc   :  { %996 = vmatprep.subr.bf16.mxu0 %v1125_v3 }
   0xe   :  { %1027 = vmatpush3.bf16.msra.mxu1 %v1140_v10 }
   0xf   :  { %997 = vmatpush3.bf16.msra.mxu0 %v1125_v3  ;;  %1028 = vmatprep.subr.bf16.mxu1 %v1141_v12 }
  0x10   :  { %998 = vmatprep.subr.bf16.mxu0 %v1126_v5 }
  0x12   :  { %1029 = vmatpush3.bf16.msra.mxu1 %v1141_v12 }
  0x13   :  { %999 = vmatpush3.bf16.msra.mxu0 %v1126_v5  ;;  %1030 = vmatprep.subr.bf16.mxu1 %v1142_v13 }
  0x14   :  { %1000 = vmatprep.subr.bf16.mxu0 %v1127_v6 }
  0x17   :  { %1001 = vmatpush3.bf16.msra.mxu0 %v1127_v6 }
  0x18   :  { %1002 = vmatprep.subr.bf16.mxu0 %v1128_v9 }
  0x1b   :  { %1003 = vmatpush3.bf16.msra.mxu0 %v1128_v9 }
  0x1c   :  { %1004 = vmatprep.subr.bf16.mxu0 %v1129_v11 }
  0x1f   :  { %1005 = vmatpush3.bf16.msra.mxu0 %v1129_v11 }
  0x22   :  { %1007 = vmatmul.mubr.bf16.vlgmr.msra.gmra.mrb[0].mxu0 %v1131_v14 }
  0x23   :  { %16 = vsyncpa [#allocation5], 0  ;;  %1010 = vmatprep.mubr.bf16.mxu0 %v1132_v15  ;;  %1031 = vmatpush3.bf16.msra.mxu1 %v1142_v13  ;;  %v1144_v17 = vld [vmem:[%s1443_s2 + $0x30] sm:$0xff]   ;;  %v1133_v18 = vld [vmem:[%s1441_s0 + $0x18] sm:$0xff]  }
  0x24   :  { %1032 = vmatprep.subr.bf16.mxu1 %v1143_v16  ;;  %v1134_v19 = vld [vmem:[%s1441_s0 + $0x20] sm:$0xff]   ;;  %v1135_v20 = vld [vmem:[%s1441_s0 + $0x28] sm:$0xff]   ;;  %v1136_v21 = vld [vmem:[%s1441_s0 + $0x30] sm:$0xff]  }
  0x25   :  { %v1137_v22 = vld [vmem:[%s1441_s0 + $0x38] sm:$0xff]   ;;  %v1146_v24 = vld [vmem:[%s1445_s4] sm:$0xff]   ;;  %v1147_v25 = vld [vmem:[%s1445_s4 + $0x8] sm:$0xff]  }
  0x26   :  { %v1145_v23 = vld [vmem:[%s1443_s2 + $0x38] sm:$0xff]   ;;  %1054 = vmatprep.subr.bf16.mxu0 %v1146_v24  ;;  %v1148_v26 = vld [vmem:[%s1445_s4 + $0x10] sm:$0xff]   ;;  %v1150_v28 = vld [vmem:[%s1445_s4 + $0x20] sm:$0xff]  }
  0x27   :  { %1033 = vmatpush3.bf16.msra.mxu1 %v1143_v16  ;;  %1055 = vmatpush3.bf16.msra.mxu0 %v1146_v24  ;;  %v1149_v27 = vld [vmem:[%s1445_s4 + $0x18] sm:$0xff]   ;;  %v1151_v29 = vld [vmem:[%s1445_s4 + $0x28] sm:$0xff]   ;;  %v1152_v54 = vld [vmem:[%s1445_s4 + $0x30] sm:$0xff]  }
  0x28   :  { %1034 = vmatprep.subr.bf16.mxu1 %v1144_v17  ;;  %1056 = vmatprep.subr.bf16.mxu0 %v1147_v25  ;;  %v1153_v55 = vld [vmem:[%s1445_s4 + $0x38] sm:$0xff]   ;;  %v1154_v56 = vld [vmem:[%s1447_s6] sm:$0xff]   ;;  %v1155_v57 = vld [vmem:[%s1447_s6 + $0x8] sm:$0xff]  }
  0x29   :  { %v1156_v58 = vld [vmem:[%s1447_s6 + $0x10] sm:$0xff]   ;;  %v1157_v59 = vld [vmem:[%s1447_s6 + $0x18] sm:$0xff]   ;;  %v1158_v60 = vld [vmem:[%s1447_s6 + $0x20] sm:$0xff]  }
  0x2a   :  { %1011 = vmatmul.mubr.bf16.gmra.mrb[4].mxu0 %v1133_v18  ;;  %v1159_v61 = vld [vmem:[%s1447_s6 + $0x28] sm:$0xff]   ;;  %v1381_v62 = vld [vmem:[%s1444_s3] ss:$0 sm:$0xff] }
  0x2b   :  { %1014 = vmatprep.mubr.bf16.mxu0 %v1134_v19  ;;  %1035 = vmatpush3.bf16.msra.mxu1 %v1144_v17 }
  0x2c   :  { %1036 = vmatprep.subr.bf16.mxu1 %v1145_v23  ;;  %1057 = vmatpush3.bf16.msra.mxu0 %v1147_v25 }
  0x2d   :  { %1058 = vmatprep.subr.bf16.mxu0 %v1148_v26 }
  0x2f   :  { %1037 = vmatpush3.bf16.msra.mxu1 %v1145_v23 }
  0x30   :  { %1059 = vmatpush3.bf16.msra.mxu0 %v1148_v26  ;;  %1086 = vmatprep.subr.bf16.mxu1 %v1154_v56 }
  0x31   :  { %1060 = vmatprep.subr.bf16.mxu0 %v1149_v27 }
  0x32   :  { %1015 = vmatmul.mubr.bf16.gmra.mrb[8].mxu0 %v1135_v20 }
  0x33   :  { %1018 = vmatprep.mubr.bf16.mxu0 %v1136_v21 }
  0x34   :  { %1061 = vmatpush3.bf16.msra.mxu0 %v1149_v27 }
  0x35   :  { %1062 = vmatprep.subr.bf16.mxu0 %v1150_v28 }
  0x38   :  { %1063 = vmatpush3.bf16.msra.mxu0 %v1150_v28 }
  0x39   :  { %1064 = vmatprep.subr.bf16.mxu0 %v1151_v29 }
  0x3a   :  { %1019 = vmatmul.mubr.bf16.gmra.mrb[12].mxu0 %v1137_v22 }
  0x3c   :  { %1065 = vmatpush3.bf16.msra.mxu0 %v1151_v29 }
  0x3d   :  { %1066 = vmatprep.subr.bf16.mxu0 %v1152_v54 }
  0x40   :  { %1067 = vmatpush3.bf16.msra.mxu0 %v1152_v54 }
  0x41   :  { %1068 = vmatprep.subr.bf16.mxu0 %v1153_v55 }
  0x44   :  { %1069 = vmatpush3.bf16.msra.mxu0 %v1153_v55  ;;  %v1160_v55 = vld [vmem:[%s1447_s6 + $0x30] sm:$0xff]  }
  0xf5   :  { %v1008_v30 = vpop.f32.mrb[0].mxu0 }
  0xf6   :  { %v196_v31 = vpop.f32.mrb[1].mxu0 }
  0xf7   :  { %v1009_v32 = vpop.f32.mrb[2].mxu0 }
  0xf8   :  { %v260_v33 = vpack.c.bf16 %v1009_v32, %v1008_v30  ;;  %v199_v34 = vpop.f32.mrb[3].mxu0 }
  0xf9   :  { %v259_v35 = vpack.c.bf16 %v199_v34, %v196_v31 }
  0xfb   :  { %1038 = vmatprep.mubr.bf16.mxu1 %v259_v35 }
  0xfc   :  { %1039 = vmatmul.mubr.bf16.vlgmr.msra.gmra.mrb[0].mxu1 %v260_v33 }
  0xfd   :  { %v1012_v36 = vpop.f32.mrb[4].mxu0  ;;  %1087 = vmatpush3.bf16.msra.mxu1 %v1154_v56  ;;  %v1161_v56 = vld [vmem:[%s1447_s6 + $0x38] sm:$0xff]  }
  0xfe   :  { %v212_v37 = vpop.f32.mrb[5].mxu0  ;;  %1088 = vmatprep.subr.bf16.mxu1 %v1155_v57 }
  0xff   :  { %v1013_v38 = vpop.f32.mrb[6].mxu0 }
 0x100   :  { %v262_v39 = vpack.c.bf16 %v1013_v38, %v1012_v36  ;;  %v215_v40 = vpop.f32.mrb[7].mxu0 }
 0x101   :  { %v261_v41 = vpack.c.bf16 %v215_v40, %v212_v37  ;;  %1089 = vmatpush3.bf16.msra.mxu1 %v1155_v57  ;;  %v908_v57 = vld [vmem:[%s1446_s5] ss:$0 sm:$0xff]  ;;  %s1210_s5 = smov [#allocation2]  }
 0x102   :  { %1090 = vmatprep.subr.bf16.mxu1 %v1156_v58  ;;  %s856_s6 = sshll.u32 %s1210_s5, 4  ;;  %s857_s6 = int_to_ptr.vmem [resolvable:$true] %s856_s6 }
 0x103   :  { %1042 = vmatprep.mubr.bf16.mxu1 %v261_v41  ;;  %s1162_s21 = scalar_lea.vmem %s857_s6, 2048  ;;  %p1167_p1 = scmp.lt.s32.totalorder %s857_s6, %s857_s6 }
 0x104   :  { %1043 = vmatmul.mubr.bf16.gmra.mrb[4].mxu1 %v262_v39  ;;  %p1163_p0 = scmp.ne.s32.totalorder %s857_s6, %s1162_s21  ;;  %p1168_p2 = scmp.lt.s32.totalorder %s1162_s21, %s1162_s21 }
 0x105   :  { %v1016_v42 = vpop.f32.mrb[8].mxu0  ;;  %1091 = vmatpush3.bf16.msra.mxu1 %v1156_v58 }
 0x106   :  { %v228_v43 = vpop.f32.mrb[9].mxu0  ;;  %1092 = vmatprep.subr.bf16.mxu1 %v1157_v59  ;;  %p1169_p3 = por %p1168_p2, %p1167_p1 }
 0x107   :  { %v1017_v44 = vpop.f32.mrb[10].mxu0 }
 0x108   :  { %v264_v45 = vpack.c.bf16 %v1017_v44, %v1016_v42  ;;  %v231_v46 = vpop.f32.mrb[11].mxu0  ;;  %p1170_p4 = pnand %p1169_p3, %p1163_p0 }
 0x109   :  { %v263_v47 = vpack.c.bf16 %v231_v46, %v228_v43  ;;  %1093 = vmatpush3.bf16.msra.mxu1 %v1157_v59 }
 0x10a   :  { %1094 = vmatprep.subr.bf16.mxu1 %v1158_v60 }
 0x10b   :  { %1046 = vmatprep.mubr.bf16.mxu1 %v263_v47 }
 0x10c   :  { %1047 = vmatmul.mubr.bf16.gmra.mrb[8].mxu1 %v264_v45 }
 0x10d   :  { %v1020_v48 = vpop.f32.mrb[12].mxu0  ;;  %1095 = vmatpush3.bf16.msra.mxu1 %v1158_v60 }
 0x10e   :  { %v244_v49 = vpop.f32.mrb[13].mxu0  ;;  %1096 = vmatprep.subr.bf16.mxu1 %v1159_v61 }
 0x10f   :  { %v1021_v50 = vpop.f32.mrb[14].mxu0 }
 0x110   :  { %v266_v51 = vpack.c.bf16 %v1021_v50, %v1020_v48  ;;  %v247_v52 = vpop.f32.mrb[15].mxu0 }
 0x111   :  { %v265_v53 = vpack.c.bf16 %v247_v52, %v244_v49  ;;  %1097 = vmatpush3.bf16.msra.mxu1 %v1159_v61 }
 0x112   :  { %1098 = vmatprep.subr.bf16.mxu1 %v1160_v55 }
 0x113   :  { %1050 = vmatprep.mubr.bf16.mxu1 %v265_v53 }
 0x114   :  { %1051 = vmatmul.mubr.bf16.gmra.mrb[12].mxu1 %v266_v51 }
 0x115   :  { %1099 = vmatpush3.bf16.msra.mxu1 %v1160_v55 }
 0x116   :  { %1100 = vmatprep.subr.bf16.mxu1 %v1161_v56 }
 0x119   :  { %1101 = vmatpush3.bf16.msra.mxu1 %v1161_v56 }
 0x1cf   :  { %v1040_v63 = vpop.f32.mrb[0].mxu1 }
 0x1d0   :  { %v381_v0 = vadd.f32 %v1040_v63, %v1381_v62  ;;  %v372_v1 = vpop.f32.mrb[1].mxu1 }
 0x1d1   :  { %v373_v2 = vadd.f32 %v1381_v62, %v372_v1  ;;  %v1041_v3 = vpop.f32.mrb[2].mxu1 }
 0x1d2   :  { %v437_v4 = vmax.f32 %v381_v0, 0.0  ;;  %v384_v5 = vadd.f32 %v1041_v3, %v1381_v62  ;;  %v375_v6 = vpop.f32.mrb[3].mxu1 }
 0x1d3   :  { %v435_v7 = vmax.f32 %v373_v2, 0.0  ;;  %v376_v8 = vadd.f32 %v1381_v62, %v375_v6 }
 0x1d4   :  { %453 = vst [vmem:[#allocation2 + $0x10] sm:$0xff] %v437_v4  ;;  %v438_v9 = vmax.f32 %v384_v5, 0.0 }
 0x1d5   :  { %451 = vst [vmem:[#allocation2] sm:$0xff] %v435_v7  ;;  %v436_v10 = vmax.f32 %v376_v8, 0.0 }
 0x1d6   :  { %454 = vst [vmem:[#allocation2 + $0x18] sm:$0xff] %v438_v9  ;;  %v468_v11 = vpack.c.bf16 %v438_v9, %v437_v4 }
 0x1d7   :  { %452 = vst [vmem:[#allocation2 + $0x8] sm:$0xff] %v436_v10  ;;  %v467_v12 = vpack.c.bf16 %v436_v10, %v435_v7  ;;  %v1044_v13 = vpop.f32.mrb[4].mxu1 }
 0x1d8   :  { %v397_v14 = vadd.f32 %v1044_v13, %v1381_v62  ;;  %v388_v15 = vpop.f32.mrb[5].mxu1 }
 0x1d9   :  { %v389_v16 = vadd.f32 %v1381_v62, %v388_v15  ;;  %v1045_v17 = vpop.f32.mrb[6].mxu1  ;;  %1070 = vmatprep.mubr.bf16.mxu0 %v467_v12 }
 0x1da   :  { %v441_v18 = vmax.f32 %v397_v14, 0.0  ;;  %v400_v19 = vadd.f32 %v1045_v17, %v1381_v62  ;;  %v391_v20 = vpop.f32.mrb[7].mxu1  ;;  %1071 = vmatmul.mubr.bf16.vlgmr.msra.gmra.mrb[16].mxu0 %v468_v11 }
 0x1db   :  { %v439_v21 = vmax.f32 %v389_v16, 0.0  ;;  %v392_v22 = vadd.f32 %v1381_v62, %v391_v20 }
 0x1dc   :  { %457 = vst [vmem:[#allocation2 + $0x30] sm:$0xff] %v441_v18  ;;  %v442_v23 = vmax.f32 %v400_v19, 0.0 }
 0x1dd   :  { %455 = vst [vmem:[#allocation2 + $0x20] sm:$0xff] %v439_v21  ;;  %v440_v24 = vmax.f32 %v392_v22, 0.0 }
 0x1de   :  { %458 = vst [vmem:[#allocation2 + $0x38] sm:$0xff] %v442_v23  ;;  %v470_v25 = vpack.c.bf16 %v442_v23, %v441_v18 }
 0x1df   :  { %456 = vst [vmem:[#allocation2 + $0x28] sm:$0xff] %v440_v24  ;;  %v469_v26 = vpack.c.bf16 %v440_v24, %v439_v21  ;;  %v1048_v27 = vpop.f32.mrb[8].mxu1 }
 0x1e0   :  { %v413_v28 = vadd.f32 %v1048_v27, %v1381_v62  ;;  %v404_v29 = vpop.f32.mrb[9].mxu1 }
 0x1e1   :  { %v405_v30 = vadd.f32 %v1381_v62, %v404_v29  ;;  %v1049_v31 = vpop.f32.mrb[10].mxu1  ;;  %1074 = vmatprep.mubr.bf16.mxu0 %v469_v26 }
 0x1e2   :  { %v445_v32 = vmax.f32 %v413_v28, 0.0  ;;  %v416_v33 = vadd.f32 %v1049_v31, %v1381_v62  ;;  %v407_v34 = vpop.f32.mrb[11].mxu1  ;;  %1075 = vmatmul.mubr.bf16.gmra.mrb[20].mxu0 %v470_v25 }
 0x1e3   :  { %v443_v35 = vmax.f32 %v405_v30, 0.0  ;;  %v408_v36 = vadd.f32 %v1381_v62, %v407_v34 }
 0x1e4   :  { %461 = vst [vmem:[#allocation2 + $0x50] sm:$0xff] %v445_v32  ;;  %v446_v37 = vmax.f32 %v416_v33, 0.0 }
 0x1e5   :  { %459 = vst [vmem:[#allocation2 + $0x40] sm:$0xff] %v443_v35  ;;  %v444_v38 = vmax.f32 %v408_v36, 0.0 }
 0x1e6   :  { %462 = vst [vmem:[#allocation2 + $0x58] sm:$0xff] %v446_v37  ;;  %v472_v39 = vpack.c.bf16 %v446_v37, %v445_v32 }
 0x1e7   :  { %460 = vst [vmem:[#allocation2 + $0x48] sm:$0xff] %v444_v38  ;;  %v471_v40 = vpack.c.bf16 %v444_v38, %v443_v35  ;;  %v1052_v41 = vpop.f32.mrb[12].mxu1 }
 0x1e8   :  { %v429_v42 = vadd.f32 %v1052_v41, %v1381_v62  ;;  %v420_v43 = vpop.f32.mrb[13].mxu1 }
 0x1e9   :  { %v421_v44 = vadd.f32 %v1381_v62, %v420_v43  ;;  %v1053_v45 = vpop.f32.mrb[14].mxu1  ;;  %1078 = vmatprep.mubr.bf16.mxu0 %v471_v40 }
 0x1ea   :  { %v449_v46 = vmax.f32 %v429_v42, 0.0  ;;  %v432_v47 = vadd.f32 %v1053_v45, %v1381_v62  ;;  %v423_v48 = vpop.f32.mrb[15].mxu1  ;;  %1079 = vmatmul.mubr.bf16.gmra.mrb[24].mxu0 %v472_v39 }
 0x1eb   :  { %v447_v49 = vmax.f32 %v421_v44, 0.0  ;;  %v424_v50 = vadd.f32 %v1381_v62, %v423_v48 }
 0x1ec   :  { %465 = vst [vmem:[#allocation2 + $0x70] sm:$0xff] %v449_v46  ;;  %v450_v51 = vmax.f32 %v432_v47, 0.0 }
 0x1ed   :  { %463 = vst [vmem:[#allocation2 + $0x60] sm:$0xff] %v447_v49  ;;  %v448_v52 = vmax.f32 %v424_v50, 0.0 }
 0x1ee   :  { %466 = vst [vmem:[#allocation2 + $0x78] sm:$0xff] %v450_v51  ;;  %v474_v53 = vpack.c.bf16 %v450_v51, %v449_v46 }
 0x1ef   :  { %464 = vst [vmem:[#allocation2 + $0x68] sm:$0xff] %v448_v52  ;;  %v473_v54 = vpack.c.bf16 %v448_v52, %v447_v49 }
 0x1f1   :  { %1082 = vmatprep.mubr.bf16.mxu0 %v473_v54 }
 0x1f2   :  { %1083 = vmatmul.mubr.bf16.gmra.mrb[28].mxu0 %v474_v53 }
 0x2ad   :  { %v1072_v58 = vpop.f32.mrb[16].mxu0 }
 0x2ae   :  { %v589_v59 = vadd.f32 %v1072_v58, %v908_v57  ;;  %v580_v60 = vpop.f32.mrb[17].mxu0 }
 0x2af   :  { %v581_v61 = vadd.f32 %v908_v57, %v580_v60  ;;  %v1073_v62 = vpop.f32.mrb[18].mxu0 }
 0x2b0   :  { %v592_v63 = vadd.f32 %v1073_v62, %v908_v57  ;;  %v583_v0 = vpop.f32.mrb[19].mxu0  ;;  %v645_v2 = vmax.f32 %v589_v59, 0.0 }
 0x2b1   :  { %v584_v1 = vadd.f32 %v908_v57, %v583_v0  ;;  %v643_v4 = vmax.f32 %v581_v61, 0.0 }
 0x2b2   :  { %v646_v3 = vmax.f32 %v592_v63, 0.0 }
 0x2b3   :  { %v644_v5 = vmax.f32 %v584_v1, 0.0 }
 0x2b4   :  { %v660_v6 = vpack.c.bf16 %v646_v3, %v645_v2 }
 0x2b5   :  { %v659_v7 = vpack.c.bf16 %v644_v5, %v643_v4  ;;  %v1076_v8 = vpop.f32.mrb[20].mxu0 }
 0x2b6   :  { %v605_v9 = vadd.f32 %v1076_v8, %v908_v57  ;;  %v596_v10 = vpop.f32.mrb[21].mxu0 }
 0x2b7   :  { %v597_v11 = vadd.f32 %v908_v57, %v596_v10  ;;  %v1077_v12 = vpop.f32.mrb[22].mxu0  ;;  %1102 = vmatprep.mubr.bf16.mxu1 %v659_v7 }
 0x2b8   :  { %v608_v13 = vadd.f32 %v1077_v12, %v908_v57  ;;  %v599_v14 = vpop.f32.mrb[23].mxu0  ;;  %1103 = vmatmul.mubr.bf16.vlgmr.msra.gmra.mrb[16].mxu1 %v660_v6  ;;  %v649_v16 = vmax.f32 %v605_v9, 0.0 }
 0x2b9   :  { %v600_v15 = vadd.f32 %v908_v57, %v599_v14  ;;  %v647_v18 = vmax.f32 %v597_v11, 0.0 }
 0x2ba   :  { %v650_v17 = vmax.f32 %v608_v13, 0.0 }
 0x2bb   :  { %v648_v19 = vmax.f32 %v600_v15, 0.0 }
 0x2bc   :  { %v662_v20 = vpack.c.bf16 %v650_v17, %v649_v16 }
 0x2bd   :  { %v661_v21 = vpack.c.bf16 %v648_v19, %v647_v18  ;;  %v1080_v22 = vpop.f32.mrb[24].mxu0 }
 0x2be   :  { %v621_v23 = vadd.f32 %v1080_v22, %v908_v57  ;;  %v612_v24 = vpop.f32.mrb[25].mxu0 }
 0x2bf   :  { %v613_v25 = vadd.f32 %v908_v57, %v612_v24  ;;  %v1081_v26 = vpop.f32.mrb[26].mxu0  ;;  %1106 = vmatprep.mubr.bf16.mxu1 %v661_v21 }
 0x2c0   :  { %v624_v27 = vadd.f32 %v1081_v26, %v908_v57  ;;  %v615_v28 = vpop.f32.mrb[27].mxu0  ;;  %1107 = vmatmul.mubr.bf16.gmra.mrb[20].mxu1 %v662_v20  ;;  %v653_v30 = vmax.f32 %v621_v23, 0.0 }
 0x2c1   :  { %v616_v29 = vadd.f32 %v908_v57, %v615_v28  ;;  %v651_v32 = vmax.f32 %v613_v25, 0.0 }
 0x2c2   :  { %v654_v31 = vmax.f32 %v624_v27, 0.0 }
 0x2c3   :  { %v652_v33 = vmax.f32 %v616_v29, 0.0 }
 0x2c4   :  { %v664_v34 = vpack.c.bf16 %v654_v31, %v653_v30 }
 0x2c5   :  { %v663_v35 = vpack.c.bf16 %v652_v33, %v651_v32  ;;  %v1084_v36 = vpop.f32.mrb[28].mxu0 }
 0x2c6   :  { %v637_v37 = vadd.f32 %v1084_v36, %v908_v57  ;;  %v628_v38 = vpop.f32.mrb[29].mxu0 }
 0x2c7   :  { %v629_v39 = vadd.f32 %v908_v57, %v628_v38  ;;  %v1085_v40 = vpop.f32.mrb[30].mxu0  ;;  %1110 = vmatprep.mubr.bf16.mxu1 %v663_v35 }
 0x2c8   :  { %v640_v41 = vadd.f32 %v1085_v40, %v908_v57  ;;  %v631_v42 = vpop.f32.mrb[31].mxu0  ;;  %1111 = vmatmul.mubr.bf16.gmra.mrb[24].mxu1 %v664_v34  ;;  %v657_v44 = vmax.f32 %v637_v37, 0.0 }
 0x2c9   :  { %v632_v43 = vadd.f32 %v908_v57, %v631_v42  ;;  %v655_v46 = vmax.f32 %v629_v39, 0.0 }
 0x2ca   :  { %v658_v45 = vmax.f32 %v640_v41, 0.0 }
 0x2cb   :  { %v656_v47 = vmax.f32 %v632_v43, 0.0 }
 0x2cc   :  { %v666_v48 = vpack.c.bf16 %v658_v45, %v657_v44 }
 0x2cd   :  { %v665_v49 = vpack.c.bf16 %v656_v47, %v655_v46 }
 0x2cf   :  { %1114 = vmatprep.mubr.bf16.mxu1 %v665_v49 }
 0x2d0   :  { %1115 = vmatmul.mubr.bf16.gmra.mrb[28].mxu1 %v666_v48 }
 0x2d1   :  { %1173 = shalt.err (!%p1170_p4)
}
 0x2d2   :  { %s1174_s24 = scalar_lea.hbm %s1449_s8, 2048 }
 0x2d3   :  { %p1175_p5 = scmp.ne.s32.totalorder %s1449_s8, %s1174_s24  ;;  %p1178_p6 = scmp.lt.u32.totalorder %s1174_s24, %s1449_s8 }
 0x2d5   :  { %p1180_p7 = pnand %p1178_p6, %p1175_p5 }
 0x2d7   :  { %1183 = shalt.err (!%p1180_p7)
}
 0x2d8   :  { %s1211_s29 = smov 128   ;;  %s1212_s30 = smov 8   ;;  %v917_v50 = vld [vmem:[%s1448_s7] ss:$0 sm:$0xff] }
 0x2d9   :  { %862 = dma.vmem_to_hbm [thread:$0]  %s857_s6, 2048, %s1449_s8, [#allocation3], %s1211_s29, %s1211_s29, %s1212_s30  }
 0x2da   :  { %s1213_s7 = smov [#allocation4]  }
 0x2db   :  { %s868_s8 = sshll.u32 %s1213_s7, 4  ;;  %s869_s8 = int_to_ptr.vmem [resolvable:$true] %s868_s8 }
 0x2dc   :  { %s1184_s13 = scalar_lea.vmem %s869_s8, 2048  ;;  %p1189_p9 = scmp.lt.s32.totalorder %s869_s8, %s869_s8 }
 0x2dd   :  { %p1185_p8 = scmp.ne.s32.totalorder %s869_s8, %s1184_s13  ;;  %p1190_p10 = scmp.lt.s32.totalorder %s1184_s13, %s1184_s13 }
 0x2df   :  { %p1191_p11 = por %p1190_p10, %p1189_p9 }
 0x2e1   :  { %p1192_p12 = pnand %p1191_p11, %p1185_p8 }
 0x38b   :  { %v1104_v51 = vpop.f32.mrb[16].mxu1 }
 0x38c   :  { %v781_v52 = vadd.f32 %v1104_v51, %v917_v50  ;;  %v772_v53 = vpop.f32.mrb[17].mxu1 }
 0x38d   :  { %v773_v54 = vadd.f32 %v917_v50, %v772_v53  ;;  %v1105_v55 = vpop.f32.mrb[18].mxu1 }
 0x38e   :  { %837 = vst [vmem:[#allocation4 + $0x10] sm:$0xff] %v781_v52  ;;  %v784_v56 = vadd.f32 %v1105_v55, %v917_v50  ;;  %v775_v57 = vpop.f32.mrb[19].mxu1 }
 0x38f   :  { %835 = vst [vmem:[#allocation4] sm:$0xff] %v773_v54  ;;  %v776_v58 = vadd.f32 %v917_v50, %v775_v57 }
 0x390   :  { %838 = vst [vmem:[#allocation4 + $0x18] sm:$0xff] %v784_v56 }
 0x391   :  { %836 = vst [vmem:[#allocation4 + $0x8] sm:$0xff] %v776_v58 }
 0x393   :  { %v1108_v59 = vpop.f32.mrb[20].mxu1 }
 0x394   :  { %v797_v60 = vadd.f32 %v1108_v59, %v917_v50  ;;  %v788_v61 = vpop.f32.mrb[21].mxu1 }
 0x395   :  { %v789_v62 = vadd.f32 %v917_v50, %v788_v61  ;;  %v1109_v63 = vpop.f32.mrb[22].mxu1 }
 0x396   :  { %841 = vst [vmem:[#allocation4 + $0x30] sm:$0xff] %v797_v60  ;;  %v800_v0 = vadd.f32 %v1109_v63, %v917_v50  ;;  %v791_v1 = vpop.f32.mrb[23].mxu1 }
 0x397   :  { %839 = vst [vmem:[#allocation4 + $0x20] sm:$0xff] %v789_v62  ;;  %v792_v2 = vadd.f32 %v917_v50, %v791_v1 }
 0x398   :  { %842 = vst [vmem:[#allocation4 + $0x38] sm:$0xff] %v800_v0 }
 0x399   :  { %840 = vst [vmem:[#allocation4 + $0x28] sm:$0xff] %v792_v2 }
 0x39b   :  { %v1112_v3 = vpop.f32.mrb[24].mxu1 }
 0x39c   :  { %v813_v4 = vadd.f32 %v1112_v3, %v917_v50  ;;  %v804_v5 = vpop.f32.mrb[25].mxu1 }
 0x39d   :  { %v805_v6 = vadd.f32 %v917_v50, %v804_v5  ;;  %v1113_v7 = vpop.f32.mrb[26].mxu1 }
 0x39e   :  { %845 = vst [vmem:[#allocation4 + $0x50] sm:$0xff] %v813_v4  ;;  %v816_v8 = vadd.f32 %v1113_v7, %v917_v50  ;;  %v807_v9 = vpop.f32.mrb[27].mxu1 }
 0x39f   :  { %843 = vst [vmem:[#allocation4 + $0x40] sm:$0xff] %v805_v6  ;;  %v808_v10 = vadd.f32 %v917_v50, %v807_v9 }
 0x3a0   :  { %846 = vst [vmem:[#allocation4 + $0x58] sm:$0xff] %v816_v8 }
 0x3a1   :  { %844 = vst [vmem:[#allocation4 + $0x48] sm:$0xff] %v808_v10 }
 0x3a3   :  { %v1116_v11 = vpop.f32.mrb[28].mxu1 }
 0x3a4   :  { %v829_v12 = vadd.f32 %v1116_v11, %v917_v50  ;;  %v820_v13 = vpop.f32.mrb[29].mxu1 }
 0x3a5   :  { %v821_v14 = vadd.f32 %v917_v50, %v820_v13  ;;  %v1117_v15 = vpop.f32.mrb[30].mxu1 }
 0x3a6   :  { %849 = vst [vmem:[#allocation4 + $0x70] sm:$0xff] %v829_v12  ;;  %v832_v16 = vadd.f32 %v1117_v15, %v917_v50  ;;  %v823_v17 = vpop.f32.mrb[31].mxu1 }
 0x3a7   :  { %847 = vst [vmem:[#allocation4 + $0x60] sm:$0xff] %v821_v14  ;;  %v824_v18 = vadd.f32 %v917_v50, %v823_v17 }
 0x3a8   :  { %850 = vst [vmem:[#allocation4 + $0x78] sm:$0xff] %v832_v16 }
 0x3a9   :  { %848 = vst [vmem:[#allocation4 + $0x68] sm:$0xff] %v824_v18 }
 0x3aa   :  { %1195 = shalt.err (!%p1192_p12)
}
 0x3ab   :  { %s1196_s16 = scalar_lea.hbm %s1450_s9, 2048 }
 0x3ac   :  { %p1197_p13 = scmp.ne.s32.totalorder %s1450_s9, %s1196_s16  ;;  %p1200_p0 = scmp.lt.u32.totalorder %s1196_s16, %s1450_s9 }
 0x3ae   :  { %p1202_p1 = pnand %p1200_p0, %p1197_p13 }
 0x3b0   :  { %1205 = shalt.err (!%p1202_p1)
}
 0x3b1   :  { %874 = dma.vmem_to_hbm [thread:$0]  %s869_s8, 2048, %s1450_s9, [#allocation5], %s1211_s29, %s1211_s29, %s1212_s30  }
 0x3b2   :  { %1206 = dma.done.wait [#allocation3], 2048  }
 0x3b3   :  { %1207 = vsyncadd [#allocation3], 4294965248 }
 0x3b4   :  { %1208 = dma.done.wait [#allocation5], 2048  }
 0x3b5   :  { %1209 = vsyncadd [#allocation5], 4294965248 }
 0x3b6   :  { %881 = vsyncpa [#allocation3], 1 }
 0x3b7   :  { %882 = vsyncpa [#allocation5], 1 }

</bundles_post_ra>
